<compile_context>
chip_gen: v6e
topology: v6e:2x2x1
jax: 0.10.0
libtpu: 0.0.40
codegen_flags: <defaults>
</compile_context>

<pallas_src>
import jax
import jax.numpy as jnp
import numpy as np
from jax.experimental import pallas as pl
from jax.experimental.pallas import tpu as pltpu

F_PAD = 128  # lane-padded feature width used for every layer


def sage_kernel(a_tile_ref, x_ref, *rest):
    """Fused 4-layer SAGE forward with streamed adjacency.

    a_tile_ref : (tm, N)     row tile of the row-normalized adjacency, bf16
    x_ref      : (N, F_PAD)  input features (zero-padded to 128 lanes), bf16
    rest       : w_n0, w_s0, b0, ..., w_n3, w_s3, b3, o_ref, a_vmem, h_vmem
                 w_* are (F_PAD, F_PAD) bf16, b_* are (1, F_PAD) f32
    o_ref      : (N, F_PAD)  final layer output, f32 (lane-dense)
    a_vmem     : (N, N)      persistent bf16 copy of A built up tile by tile
    h_vmem     : (N, F_PAD)  persistent bf16 layer-0 activations
    """
    h_vmem = rest[-1]
    a_vmem = rest[-2]
    o_ref = rest[-3]
    wb = rest[:-3]
    n_layers = len(wb) // 3

    i = pl.program_id(0)
    n_tiles = pl.num_programs(0)
    tm = a_tile_ref.shape[0]
    row0 = pl.multiple_of(i * tm, tm)

    # Keep this streamed A tile resident so layers 1..3 reuse it from VMEM.
    a_tile = a_tile_ref[...]                                   # (tm, N) bf16
    a_vmem[pl.ds(row0, tm), :] = a_tile

    # ---- Layer 0 for this row tile (overlaps the DMA of the next A tile) ----
    x = x_ref[...]                                             # (N, F_PAD) bf16
    agg0 = jnp.dot(a_tile, x, preferred_element_type=jnp.float32)   # (tm, F_PAD)
    h_self0 = x_ref[pl.ds(row0, tm), :]                        # (tm, F_PAD) bf16
    w_n0, w_s0, b0 = wb[0][...], wb[1][...], wb[2][...]
    h0 = (jnp.dot(agg0.astype(jnp.bfloat16), w_n0,
                  preferred_element_type=jnp.float32)
          + jnp.dot(h_self0, w_s0, preferred_element_type=jnp.float32)
          + b0)
    h0 = jnp.maximum(h0, 0.0)          # ReLU; dropout == identity (eval mode)
    h_vmem[pl.ds(row0, tm), :] = h0.astype(jnp.bfloat16)

    # ---- Layers 1..last, once, on the fully-resident graph ----
    @pl.when(i == n_tiles - 1)
    def _():
        h = h_vmem[...]                                        # (N, F_PAD) bf16
        out = None
        for l in range(1, n_layers):
            w_n, w_s, b = wb[3 * l][...], wb[3 * l + 1][...], wb[3 * l + 2][...]
            agg = jnp.dot(a_vmem[...], h, preferred_element_type=jnp.float32)
            out = (jnp.dot(agg.astype(jnp.bfloat16), w_n,
                           preferred_element_type=jnp.float32)
                   + jnp.dot(h, w_s, preferred_element_type=jnp.float32)
                   + b)
            if l != n_layers - 1:
                out = jnp.maximum(out, 0.0)
                h = out.astype(jnp.bfloat16)
        o_ref[...] = out.astype(o_ref.dtype)


def _round_up(x, m):
    return ((x + m - 1) // m) * m


@jax.jit
def sage_forward(a, x, params):
    """Full 4-layer SAGE forward pass. params: list of (w_self, w_neigh, b)."""
    assert len(params) >= 2
    n0 = a.shape[0]
    f_in = x.shape[1]
    n_classes = params[-1][0].shape[1]
    n = _round_up(n0, 128)

    # Fused kernel keeps A resident in VMEM; use the blocked variant beyond this.
    assert n <= 2048, "use a (tm, tk)-blocked variant for larger subgraphs"

    tm = 128 if (n <= 512 or n % 256 != 0) else 256
    n_tiles = n // tm

    # Pad nodes (zero rows/cols == isolated nodes: safe for mean aggregation)
    # and cast the heavy operands to bf16 before padding (no f32 temporary).
    a_p = jnp.pad(a.astype(jnp.bfloat16), ((0, n - n0), (0, n - n0)))
    x_p = jnp.pad(x.astype(jnp.bfloat16), ((0, n - n0), (0, F_PAD - f_in)))

    wb_inputs = []
    for (w_self, w_neigh, b) in params:
        fi, fo = w_self.shape
        w_n = jnp.pad(w_neigh.astype(jnp.bfloat16),
                      ((0, F_PAD - fi), (0, F_PAD - fo)))
        w_s = jnp.pad(w_self.astype(jnp.bfloat16),
                      ((0, F_PAD - fi), (0, F_PAD - fo)))
        b_p = jnp.pad(b.reshape(1, -1).astype(jnp.float32),
                      ((0, 0), (0, F_PAD - fo)))
        wb_inputs += [w_n, w_s, b_p]

    in_specs = ([pl.BlockSpec((tm, n), lambda i: (i, 0)),        # A: streamed row tiles
                 pl.BlockSpec((n, F_PAD), lambda i: (0, 0))]     # x: resident
                + [pl.BlockSpec(arr.shape, lambda i: (0, 0)) for arr in wb_inputs])

    out = pl.pallas_call(
        sage_kernel,
        out_shape=jax.ShapeDtypeStruct((n, F_PAD), jnp.float32),
        grid=(n_tiles,),
        in_specs=in_specs,
        out_specs=pl.BlockSpec((n, F_PAD), lambda i: (0, 0)),
        scratch_shapes=[pltpu.VMEM((n, n), jnp.bfloat16),        # resident A
                        pltpu.VMEM((n, F_PAD), jnp.bfloat16)],   # layer-0 output
        compiler_params=pltpu.CompilerParams(
            dimension_semantics=("arbitrary",),
            vmem_limit_bytes=48 * 1024 * 1024),
    )(a_p, x_p, *wb_inputs)

    return out[:n0, :n_classes]


def sage_forward_ref(a, x, params):
    """Pure-JAX reference mirroring the kernel's math (bf16 operands on every
    matmul, f32 accumulation, bf16 activations between layers)."""
    a_bf = a.astype(jnp.bfloat16)
    h = x.astype(jnp.bfloat16)
    n_layers = len(params)
    out = None
    for l, (w_self, w_neigh, b) in enumerate(params):
        agg = jnp.dot(a_bf, h, preferred_element_type=jnp.float32)
        out = (jnp.dot(agg.astype(jnp.bfloat16), w_neigh.astype(jnp.bfloat16),
                       preferred_element_type=jnp.float32)
               + jnp.dot(h, w_self.astype(jnp.bfloat16),
                         preferred_element_type=jnp.float32)
               + b)
        if l != n_layers - 1:
            out = jnp.maximum(out, 0.0)
            h = out.astype(jnp.bfloat16)
    return out


def make_params(key, in_feats, n_hidden, n_classes):
    dims = [(in_feats, n_hidden), (n_hidden, n_hidden),
            (n_hidden, n_hidden), (n_hidden, n_classes)]
    params = []
    for (fi, fo) in dims:
        key, k1, k2, k3 = jax.random.split(key, 4)
        scale = 1.0 / np.sqrt(fi)
        w_self = jax.random.normal(k1, (fi, fo), jnp.float32) * scale
        w_neigh = jax.random.normal(k2, (fi, fo), jnp.float32) * scale
        b = jax.random.normal(k3, (1, fo), jnp.float32) * 0.1
        params.append((w_self, w_neigh, b))
    return params


if __name__ == "__main__":
    N = 256          # number of nodes in the sampled subgraph
    IN_FEATS = 32
    N_HIDDEN = 64
    N_CLASSES = 16

    key = jax.random.PRNGKey(0)
    key, k_adj, k_x, k_par = jax.random.split(key, 4)

    # Random sparse-ish graph, then row-normalize (mean aggregation).
    adj = jax.random.bernoulli(k_adj, p=0.05, shape=(N, N)).astype(jnp.float32)
    deg = jnp.sum(adj, axis=1, keepdims=True)
    a = adj / jnp.maximum(deg, 1.0)   # isolated nodes -> zero row -> h_neigh = 0

    x = jax.random.normal(k_x, (N, IN_FEATS), jnp.float32)
    params = make_params(k_par, IN_FEATS, N_HIDDEN, N_CLASSES)

    out = jax.block_until_ready(sage_forward(a, x, params))
    ref = jax.block_until_ready(sage_forward_ref(a, x, params))

    assert out.shape == (N, N_CLASSES), out.shape
    np.testing.assert_allclose(np.asarray(out), np.asarray(ref),
                               rtol=2e-2, atol=2e-2)
    print("KERNEL_OK")
</pallas_src>

<mosaic_0001>
module attributes {stable_mosaic.version = 11 : i64} {
  func.func @sage_kernel(%arg0: i32, %arg1: memref<128x256xbf16, #tpu.memory_space<vmem>>, %arg2: memref<256x128xbf16, #tpu.memory_space<vmem>>, %arg3: memref<128x128xbf16, #tpu.memory_space<vmem>>, %arg4: memref<128x128xbf16, #tpu.memory_space<vmem>>, %arg5: memref<1x128xf32, #tpu.memory_space<vmem>>, %arg6: memref<128x128xbf16, #tpu.memory_space<vmem>>, %arg7: memref<128x128xbf16, #tpu.memory_space<vmem>>, %arg8: memref<1x128xf32, #tpu.memory_space<vmem>>, %arg9: memref<128x128xbf16, #tpu.memory_space<vmem>>, %arg10: memref<128x128xbf16, #tpu.memory_space<vmem>>, %arg11: memref<1x128xf32, #tpu.memory_space<vmem>>, %arg12: memref<128x128xbf16, #tpu.memory_space<vmem>>, %arg13: memref<128x128xbf16, #tpu.memory_space<vmem>>, %arg14: memref<1x128xf32, #tpu.memory_space<vmem>>, %arg15: memref<256x128xf32, #tpu.memory_space<vmem>>, %arg16: memref<256x256xbf16, #tpu.memory_space<vmem>>, %arg17: memref<256x128xbf16, #tpu.memory_space<vmem>>) attributes {dimension_semantics = [#tpu.dimension_semantics<arbitrary>], iteration_bounds = array<i64: 2>, scalar_prefetch = 0 : i64, scratch_operands = 2 : i64, tpu.core_type = #tpu.core_type<tc>, window_params = [{transform_indices = @transform_0, window_bounds = array<i64: 128, 256>}, {pipeline_mode = #tpu.pipeline_mode<synchronous>, transform_indices = @transform_1, window_bounds = array<i64: 256, 128>}, {pipeline_mode = #tpu.pipeline_mode<synchronous>, transform_indices = @transform_2, window_bounds = array<i64: 128, 128>}, {pipeline_mode = #tpu.pipeline_mode<synchronous>, transform_indices = @transform_3, window_bounds = array<i64: 128, 128>}, {pipeline_mode = #tpu.pipeline_mode<synchronous>, transform_indices = @transform_4, window_bounds = array<i64: 1, 128>}, {pipeline_mode = #tpu.pipeline_mode<synchronous>, transform_indices = @transform_5, window_bounds = array<i64: 128, 128>}, {pipeline_mode = #tpu.pipeline_mode<synchronous>, transform_indices = @transform_6, window_bounds = array<i64: 128, 128>}, {pipeline_mode = #tpu.pipeline_mode<synchronous>, transform_indices = @transform_7, window_bounds = array<i64: 1, 128>}, {pipeline_mode = #tpu.pipeline_mode<synchronous>, transform_indices = @transform_8, window_bounds = array<i64: 128, 128>}, {pipeline_mode = #tpu.pipeline_mode<synchronous>, transform_indices = @transform_9, window_bounds = array<i64: 128, 128>}, {pipeline_mode = #tpu.pipeline_mode<synchronous>, transform_indices = @transform_10, window_bounds = array<i64: 1, 128>}, {pipeline_mode = #tpu.pipeline_mode<synchronous>, transform_indices = @transform_11, window_bounds = array<i64: 128, 128>}, {pipeline_mode = #tpu.pipeline_mode<synchronous>, transform_indices = @transform_12, window_bounds = array<i64: 128, 128>}, {pipeline_mode = #tpu.pipeline_mode<synchronous>, transform_indices = @transform_13, window_bounds = array<i64: 1, 128>}, {pipeline_mode = #tpu.pipeline_mode<synchronous>, transform_indices = @transform_14, window_bounds = array<i64: 256, 128>}]} {
    %c128_i32 = arith.constant 128 : i32
    %0 = arith.muli %arg0, %c128_i32 : i32
    %1 = tpu.assume_multiple %0, 128 : i32
    %c0 = arith.constant 0 : index
    %c0_0 = arith.constant 0 : index
    %2 = vector.load %arg1[%c0, %c0_0] : memref<128x256xbf16, #tpu.memory_space<vmem>>, vector<128x256xbf16>
    %3 = arith.index_cast %1 : i32 to index
    %c0_1 = arith.constant 0 : index
    %4 = vector.load %arg16[%3, %c0_1] : memref<256x256xbf16, #tpu.memory_space<vmem>>, vector<128x256xbf16>
    tpu.vector_store %arg16[%3, %c0_1], %2 {strides = array<i32>} : memref<256x256xbf16, #tpu.memory_space<vmem>>, vector<128x256xbf16>,
    %c0_2 = arith.constant 0 : index
    %c0_3 = arith.constant 0 : index
    %5 = vector.load %arg2[%c0_2, %c0_3] : memref<256x128xbf16, #tpu.memory_space<vmem>>, vector<256x128xbf16>
    %cst = arith.constant dense<0.000000e+00> : vector<128x128xf32>
    %6 = tpu.matmul %2, %5, %cst {dimension_numbers = #tpu.dot_dimension_numbers<[1], [0], [0], [1], [0, 0, 1, 1], [], []>} : vector<128x256xbf16>, vector<256x128xbf16>, vector<128x128xf32> -> vector<128x128xf32>
    %7 = arith.index_cast %1 : i32 to index
    %c0_4 = arith.constant 0 : index
    %8 = vector.load %arg2[%7, %c0_4] : memref<256x128xbf16, #tpu.memory_space<vmem>>, vector<128x128xbf16>
    %c0_5 = arith.constant 0 : index
    %c0_6 = arith.constant 0 : index
    %9 = vector.load %arg3[%c0_5, %c0_6] : memref<128x128xbf16, #tpu.memory_space<vmem>>, vector<128x128xbf16>
    %c0_7 = arith.constant 0 : index
    %c0_8 = arith.constant 0 : index
    %10 = vector.load %arg4[%c0_7, %c0_8] : memref<128x128xbf16, #tpu.memory_space<vmem>>, vector<128x128xbf16>
    %c0_9 = arith.constant 0 : index
    %c0_10 = arith.constant 0 : index
    %11 = vector.load %arg5[%c0_9, %c0_10] : memref<1x128xf32, #tpu.memory_space<vmem>>, vector<1x128xf32>
    %12 = arith.truncf %6 : vector<128x128xf32> to vector<128x128xbf16>
    %cst_11 = arith.constant dense<0.000000e+00> : vector<128x128xf32>
    %13 = tpu.matmul %12, %9, %cst_11 {dimension_numbers = #tpu.dot_dimension_numbers<[1], [0], [0], [1], [0, 0, 1, 1], [], []>} : vector<128x128xbf16>, vector<128x128xbf16>, vector<128x128xf32> -> vector<128x128xf32>
    %cst_12 = arith.constant dense<0.000000e+00> : vector<128x128xf32>
    %14 = tpu.matmul %8, %10, %cst_12 {dimension_numbers = #tpu.dot_dimension_numbers<[1], [0], [0], [1], [0, 0, 1, 1], [], []>} : vector<128x128xbf16>, vector<128x128xbf16>, vector<128x128xf32> -> vector<128x128xf32>
    %15 = arith.addf %13, %14 : vector<128x128xf32>
    %16 = vector.broadcast %11 : vector<1x128xf32> to vector<128x128xf32>
    %17 = arith.addf %15, %16 : vector<128x128xf32>
    %cst_13 = arith.constant 0.000000e+00 : f32
    %18 = vector.broadcast %cst_13 : f32 to vector<128x128xf32>
    %19 = arith.maximumf %17, %18 : vector<128x128xf32>
    %20 = arith.truncf %19 : vector<128x128xf32> to vector<128x128xbf16>
    %21 = arith.index_cast %1 : i32 to index
    %c0_14 = arith.constant 0 : index
    %22 = vector.load %arg17[%21, %c0_14] : memref<256x128xbf16, #tpu.memory_space<vmem>>, vector<128x128xbf16>
    tpu.vector_store %arg17[%21, %c0_14], %20 {strides = array<i32>} : memref<256x128xbf16, #tpu.memory_space<vmem>>, vector<128x128xbf16>,
    %c1_i32 = arith.constant 1 : i32
    %23 = arith.cmpi eq, %arg0, %c1_i32 : i32
    %24 = arith.extui %23 : i1 to i32
    %c0_i32 = arith.constant 0 : i32
    %25 = arith.cmpi ne, %24, %c0_i32 : i32
    scf.if %25 {
      %c0_15 = arith.constant 0 : index
      %c0_16 = arith.constant 0 : index
      %26 = vector.load %arg17[%c0_15, %c0_16] : memref<256x128xbf16, #tpu.memory_space<vmem>>, vector<256x128xbf16>
      %c0_17 = arith.constant 0 : index
      %c0_18 = arith.constant 0 : index
      %27 = vector.load %arg6[%c0_17, %c0_18] : memref<128x128xbf16, #tpu.memory_space<vmem>>, vector<128x128xbf16>
      %c0_19 = arith.constant 0 : index
      %c0_20 = arith.constant 0 : index
      %28 = vector.load %arg7[%c0_19, %c0_20] : memref<128x128xbf16, #tpu.memory_space<vmem>>, vector<128x128xbf16>
      %c0_21 = arith.constant 0 : index
      %c0_22 = arith.constant 0 : index
      %29 = vector.load %arg8[%c0_21, %c0_22] : memref<1x128xf32, #tpu.memory_space<vmem>>, vector<1x128xf32>
      %c0_23 = arith.constant 0 : index
      %c0_24 = arith.constant 0 : index
      %30 = vector.load %arg16[%c0_23, %c0_24] : memref<256x256xbf16, #tpu.memory_space<vmem>>, vector<256x256xbf16>
      %cst_25 = arith.constant dense<0.000000e+00> : vector<256x128xf32>
      %31 = tpu.matmul %30, %26, %cst_25 {dimension_numbers = #tpu.dot_dimension_numbers<[1], [0], [0], [1], [0, 0, 1, 1], [], []>} : vector<256x256xbf16>, vector<256x128xbf16>, vector<256x128xf32> -> vector<256x128xf32>
      %32 = arith.truncf %31 : vector<256x128xf32> to vector<256x128xbf16>
      %cst_26 = arith.constant dense<0.000000e+00> : vector<256x128xf32>
      %33 = tpu.matmul %32, %27, %cst_26 {dimension_numbers = #tpu.dot_dimension_numbers<[1], [0], [0], [1], [0, 0, 1, 1], [], []>} : vector<256x128xbf16>, vector<128x128xbf16>, vector<256x128xf32> -> vector<256x128xf32>
      %cst_27 = arith.constant dense<0.000000e+00> : vector<256x128xf32>
      %34 = tpu.matmul %26, %28, %cst_27 {dimension_numbers = #tpu.dot_dimension_numbers<[1], [0], [0], [1], [0, 0, 1, 1], [], []>} : vector<256x128xbf16>, vector<128x128xbf16>, vector<256x128xf32> -> vector<256x128xf32>
      %35 = arith.addf %33, %34 : vector<256x128xf32>
      %36 = vector.broadcast %29 : vector<1x128xf32> to vector<256x128xf32>
      %37 = arith.addf %35, %36 : vector<256x128xf32>
      %cst_28 = arith.constant 0.000000e+00 : f32
      %38 = vector.broadcast %cst_28 : f32 to vector<256x128xf32>
      %39 = arith.maximumf %37, %38 : vector<256x128xf32>
      %40 = arith.truncf %39 : vector<256x128xf32> to vector<256x128xbf16>
      %c0_29 = arith.constant 0 : index
      %c0_30 = arith.constant 0 : index
      %41 = vector.load %arg9[%c0_29, %c0_30] : memref<128x128xbf16, #tpu.memory_space<vmem>>, vector<128x128xbf16>
      %c0_31 = arith.constant 0 : index
      %c0_32 = arith.constant 0 : index
      %42 = vector.load %arg10[%c0_31, %c0_32] : memref<128x128xbf16, #tpu.memory_space<vmem>>, vector<128x128xbf16>
      %c0_33 = arith.constant 0 : index
      %c0_34 = arith.constant 0 : index
      %43 = vector.load %arg11[%c0_33, %c0_34] : memref<1x128xf32, #tpu.memory_space<vmem>>, vector<1x128xf32>
      %c0_35 = arith.constant 0 : index
      %c0_36 = arith.constant 0 : index
      %44 = vector.load %arg16[%c0_35, %c0_36] : memref<256x256xbf16, #tpu.memory_space<vmem>>, vector<256x256xbf16>
      %cst_37 = arith.constant dense<0.000000e+00> : vector<256x128xf32>
      %45 = tpu.matmul %44, %40, %cst_37 {dimension_numbers = #tpu.dot_dimension_numbers<[1], [0], [0], [1], [0, 0, 1, 1], [], []>} : vector<256x256xbf16>, vector<256x128xbf16>, vector<256x128xf32> -> vector<256x128xf32>
      %46 = arith.truncf %45 : vector<256x128xf32> to vector<256x128xbf16>
      %cst_38 = arith.constant dense<0.000000e+00> : vector<256x128xf32>
      %47 = tpu.matmul %46, %41, %cst_38 {dimension_numbers = #tpu.dot_dimension_numbers<[1], [0], [0], [1], [0, 0, 1, 1], [], []>} : vector<256x128xbf16>, vector<128x128xbf16>, vector<256x128xf32> -> vector<256x128xf32>
      %cst_39 = arith.constant dense<0.000000e+00> : vector<256x128xf32>
      %48 = tpu.matmul %40, %42, %cst_39 {dimension_numbers = #tpu.dot_dimension_numbers<[1], [0], [0], [1], [0, 0, 1, 1], [], []>} : vector<256x128xbf16>, vector<128x128xbf16>, vector<256x128xf32> -> vector<256x128xf32>
      %49 = arith.addf %47, %48 : vector<256x128xf32>
      %50 = vector.broadcast %43 : vector<1x128xf32> to vector<256x128xf32>
      %51 = arith.addf %49, %50 : vector<256x128xf32>
      %cst_40 = arith.constant 0.000000e+00 : f32
      %52 = vector.broadcast %cst_40 : f32 to vector<256x128xf32>
      %53 = arith.maximumf %51, %52 : vector<256x128xf32>
      %54 = arith.truncf %53 : vector<256x128xf32> to vector<256x128xbf16>
      %c0_41 = arith.constant 0 : index
      %c0_42 = arith.constant 0 : index
      %55 = vector.load %arg12[%c0_41, %c0_42] : memref<128x128xbf16, #tpu.memory_space<vmem>>, vector<128x128xbf16>
      %c0_43 = arith.constant 0 : index
      %c0_44 = arith.constant 0 : index
      %56 = vector.load %arg13[%c0_43, %c0_44] : memref<128x128xbf16, #tpu.memory_space<vmem>>, vector<128x128xbf16>
      %c0_45 = arith.constant 0 : index
      %c0_46 = arith.constant 0 : index
      %57 = vector.load %arg14[%c0_45, %c0_46] : memref<1x128xf32, #tpu.memory_space<vmem>>, vector<1x128xf32>
      %c0_47 = arith.constant 0 : index
      %c0_48 = arith.constant 0 : index
      %58 = vector.load %arg16[%c0_47, %c0_48] : memref<256x256xbf16, #tpu.memory_space<vmem>>, vector<256x256xbf16>
      %cst_49 = arith.constant dense<0.000000e+00> : vector<256x128xf32>
      %59 = tpu.matmul %58, %54, %cst_49 {dimension_numbers = #tpu.dot_dimension_numbers<[1], [0], [0], [1], [0, 0, 1, 1], [], []>} : vector<256x256xbf16>, vector<256x128xbf16>, vector<256x128xf32> -> vector<256x128xf32>
      %60 = arith.truncf %59 : vector<256x128xf32> to vector<256x128xbf16>
      %cst_50 = arith.constant dense<0.000000e+00> : vector<256x128xf32>
      %61 = tpu.matmul %60, %55, %cst_50 {dimension_numbers = #tpu.dot_dimension_numbers<[1], [0], [0], [1], [0, 0, 1, 1], [], []>} : vector<256x128xbf16>, vector<128x128xbf16>, vector<256x128xf32> -> vector<256x128xf32>
      %cst_51 = arith.constant dense<0.000000e+00> : vector<256x128xf32>
      %62 = tpu.matmul %54, %56, %cst_51 {dimension_numbers = #tpu.dot_dimension_numbers<[1], [0], [0], [1], [0, 0, 1, 1], [], []>} : vector<256x128xbf16>, vector<128x128xbf16>, vector<256x128xf32> -> vector<256x128xf32>
      %63 = arith.addf %61, %62 : vector<256x128xf32>
      %64 = vector.broadcast %57 : vector<1x128xf32> to vector<256x128xf32>
      %65 = arith.addf %63, %64 : vector<256x128xf32>
      %c0_52 = arith.constant 0 : index
      %c0_53 = arith.constant 0 : index
      %66 = vector.load %arg15[%c0_52, %c0_53] : memref<256x128xf32, #tpu.memory_space<vmem>>, vector<256x128xf32>
      tpu.vector_store %arg15[%c0_52, %c0_53], %65 {strides = array<i32>} : memref<256x128xf32, #tpu.memory_space<vmem>>, vector<256x128xf32>,
    } else {
    }
    return
  }
  func.func @transform_0(%arg0: i32) -> (i32, i32) {
    %c0_i32 = arith.constant 0 : i32
    %c0_i32_0 = arith.constant 0 : i32
    return %arg0, %c0_i32 : i32, i32
  }
  func.func @transform_1(%arg0: i32) -> (i32, i32) {
    %c0_i32 = arith.constant 0 : i32
    %c0_i32_0 = arith.constant 0 : i32
    %c0_i32_1 = arith.constant 0 : i32
    return %c0_i32, %c0_i32_0 : i32, i32
  }
  func.func @transform_2(%arg0: i32) -> (i32, i32) {
    %c0_i32 = arith.constant 0 : i32
    %c0_i32_0 = arith.constant 0 : i32
    %c0_i32_1 = arith.constant 0 : i32
    return %c0_i32, %c0_i32_0 : i32, i32
  }
  func.func @transform_3(%arg0: i32) -> (i32, i32) {
    %c0_i32 = arith.constant 0 : i32
    %c0_i32_0 = arith.constant 0 : i32
    %c0_i32_1 = arith.constant 0 : i32
    return %c0_i32, %c0_i32_0 : i32, i32
  }
  func.func @transform_4(%arg0: i32) -> (i32, i32) {
    %c0_i32 = arith.constant 0 : i32
    %c0_i32_0 = arith.constant 0 : i32
    %c0_i32_1 = arith.constant 0 : i32
    return %c0_i32, %c0_i32_0 : i32, i32
  }
  func.func @transform_5(%arg0: i32) -> (i32, i32) {
    %c0_i32 = arith.constant 0 : i32
    %c0_i32_0 = arith.constant 0 : i32
    %c0_i32_1 = arith.constant 0 : i32
    return %c0_i32, %c0_i32_0 : i32, i32
  }
  func.func @transform_6(%arg0: i32) -> (i32, i32) {
    %c0_i32 = arith.constant 0 : i32
    %c0_i32_0 = arith.constant 0 : i32
    %c0_i32_1 = arith.constant 0 : i32
    return %c0_i32, %c0_i32_0 : i32, i32
  }
  func.func @transform_7(%arg0: i32) -> (i32, i32) {
    %c0_i32 = arith.constant 0 : i32
    %c0_i32_0 = arith.constant 0 : i32
    %c0_i32_1 = arith.constant 0 : i32
    return %c0_i32, %c0_i32_0 : i32, i32
  }
  func.func @transform_8(%arg0: i32) -> (i32, i32) {
    %c0_i32 = arith.constant 0 : i32
    %c0_i32_0 = arith.constant 0 : i32
    %c0_i32_1 = arith.constant 0 : i32
    return %c0_i32, %c0_i32_0 : i32, i32
  }
  func.func @transform_9(%arg0: i32) -> (i32, i32) {
    %c0_i32 = arith.constant 0 : i32
    %c0_i32_0 = arith.constant 0 : i32
    %c0_i32_1 = arith.constant 0 : i32
    return %c0_i32, %c0_i32_0 : i32, i32
  }
  func.func @transform_10(%arg0: i32) -> (i32, i32) {
    %c0_i32 = arith.constant 0 : i32
    %c0_i32_0 = arith.constant 0 : i32
    %c0_i32_1 = arith.constant 0 : i32
    return %c0_i32, %c0_i32_0 : i32, i32
  }
  func.func @transform_11(%arg0: i32) -> (i32, i32) {
    %c0_i32 = arith.constant 0 : i32
    %c0_i32_0 = arith.constant 0 : i32
    %c0_i32_1 = arith.constant 0 : i32
    return %c0_i32, %c0_i32_0 : i32, i32
  }
  func.func @transform_12(%arg0: i32) -> (i32, i32) {
    %c0_i32 = arith.constant 0 : i32
    %c0_i32_0 = arith.constant 0 : i32
    %c0_i32_1 = arith.constant 0 : i32
    return %c0_i32, %c0_i32_0 : i32, i32
  }
  func.func @transform_13(%arg0: i32) -> (i32, i32) {
    %c0_i32 = arith.constant 0 : i32
    %c0_i32_0 = arith.constant 0 : i32
    %c0_i32_1 = arith.constant 0 : i32
    return %c0_i32, %c0_i32_0 : i32, i32
  }
  func.func @transform_14(%arg0: i32) -> (i32, i32) {
    %c0_i32 = arith.constant 0 : i32
    %c0_i32_0 = arith.constant 0 : i32
    %c0_i32_1 = arith.constant 0 : i32
    return %c0_i32, %c0_i32_0 : i32, i32
  }
}

</mosaic_0001>

<bundles_post_ra>
// kernel: sage_forward.1
= control target key start
LH: loop header
LB: loop body
LE: loop exit
PB: predicated region body
PF: predicated region fallthrough
CT: control target
= control target key end

     0   :  { %s5274_s29 = smov 0   ;;  %s6438_s0 = inlined_call_operand.vmem [shape: bf16[256,256], index: 0, kind: input, shape index: {}]   ;;  %s6439_s1 = inlined_call_operand.vmem [shape: bf16[256,128], index: 1, kind: input, shape index: {}]   ;;  %s6440_s2 = inlined_call_operand.vmem [shape: bf16[128,128], index: 2, kind: input, shape index: {}]   ;;  %s6441_s3 = inlined_call_operand.vmem [shape: bf16[128,128], index: 3, kind: input, shape index: {}]   ;;  %s6442_s4 = inlined_call_operand.vmem [shape: f32[1,128], index: 4, kind: input, shape index: {}]   ;;  %s6443_s5 = inlined_call_operand.vmem [shape: bf16[128,128], index: 5, kind: input, shape index: {}]   ;;  %s6444_s6 = inlined_call_operand.vmem [shape: bf16[128,128], index: 6, kind: input, shape index: {}]   ;;  %s6445_s7 = inlined_call_operand.vmem [shape: f32[1,128], index: 7, kind: input, shape index: {}]   ;;  %s6446_s8 = inlined_call_operand.vmem [shape: bf16[128,128], index: 8, kind: input, shape index: {}]   ;;  %s6447_s9 = inlined_call_operand.vmem [shape: bf16[128,128], index: 9, kind: input, shape index: {}]   ;;  %s6448_s10 = inlined_call_operand.vmem [shape: f32[1,128], index: 10, kind: input, shape index: {}]   ;;  %s6449_s11 = inlined_call_operand.vmem [shape: bf16[128,128], index: 11, kind: input, shape index: {}]   ;;  %s6450_s12 = inlined_call_operand.vmem [shape: bf16[128,128], index: 12, kind: input, shape index: {}]   ;;  %s6451_s13 = inlined_call_operand.vmem [shape: f32[1,128], index: 13, kind: input, shape index: {}]   ;;  %s6452_s14 = inlined_call_operand.vmem [shape: f32[256,128], index: 14, kind: output, shape index: {}]  }
   0x1 LB: > { %s5280_s30 = sadd.s32 4294967295, %s5197_s29   ;;  %p3806_p0 = scmp.ge.s32.totalorder %s5197_s29, 1  ;;  %s5197_s29 = sphi %s5274_s29, %s24_s29  }
   0x2   : > { %p409_p1 = scmp.lt.s32.totalorder %s5197_s29, 3 }
   0x4   : > { %p410_p2 = pnand %p3806_p0, %p409_p1 }
   0x5   : > { %s3807_s17 = sshll.u32 (!%p410_p2), %s5280_s30, 4  ;;  %p3888_p4 = scmp.ne.s32.totalorder (!%p410_p2), %s5280_s30, 1 }
   0x6   : > { %413 = sbr.rel (%p410_p2) target bundleno = 2197 (0x895), region = 76  ;;  %p452_p3 = scmp.lt.s32.totalorder (!%p410_p2), %s3807_s17, 31 }
   0xb   : > { %v4991_v0 = vld [vmem:[%s6439_s1 + $0x78] sm:$0xff]   ;;  %v4993_v2 = vld [vmem:[%s6439_s1 + $0x70] sm:$0xff]   ;;  %v4995_v4 = vld [vmem:[%s6439_s1 + $0x68] sm:$0xff]   ;;  %s6472_s17 = smov (!%p452_p3, %s3807_s17), 31 }
   0xc   : > { %v4992_v1 = vld [vmem:[%s6439_s1 + $0x38] sm:$0xff]   ;;  %4055 = vmatprep.subr.bf16.mxu0 %v4991_v0  ;;  %v4994_v3 = vld [vmem:[%s6439_s1 + $0x30] sm:$0xff]   ;;  %v4996_v5 = vld [vmem:[%s6439_s1 + $0x28] sm:$0xff]   ;;  %s3990_s16 = sshll.u32 %s6472_s17, 3  ;;  %s3810_s17 = sshll.u32 %s5280_s30, 7 }
   0xd   : > { %4056 = vmatpush3.bf16.msra.mxu0 %v4992_v1  ;;  %v4997_v6 = vld [vmem:[%s6439_s1 + $0x60] sm:$0xff]   ;;  %v4999_v8 = vld [vmem:[%s6439_s1 + $0x58] sm:$0xff]   ;;  %s5315_s24 = scalar_lea.vmem %s6438_s0, %s3990_s16  ;;  %v5001_v10 = vld [vmem:[%s6439_s1 + $0x50] sm:$0xff]   ;;  %s5338_s18 = scalar_lea.vmem [#allocation2], %s3810_s17 }
   0xe   : > { %4057 = vmatprep.subr.bf16.mxu0 %v4993_v2  ;;  %v4998_v7 = vld [vmem:[%s6439_s1 + $0x20] sm:$0xff]   ;;  %v5000_v9 = vld [vmem:[%s6439_s1 + $0x18] sm:$0xff]   ;;  %v5328_v12 = vld [vmem:[%s5315_s24 + $0x8] sm:$0xff]  ;;  %s5419_s23 = sshra.s32 %s3810_s17, 3 }
   0xf   : > { %v5325_v11 = vld [vmem:[%s5315_s24] sm:$0xff]  ;;  %v5331_v13 = vld [vmem:[%s5315_s24 + $0x10] sm:$0xff]  ;;  %482 = vst [vmem:[%s5338_s18 + $0x8] sm:$0xff] %v5328_v12  ;;  %v5347_v16 = vld [vmem:[%s5315_s24 + $0x18] sm:$0xff]  ;;  %s3845_s15 = sshll.u32 %s5419_s23, 2 }
  0x10   : > { %v5002_v14 = vld [vmem:[%s6439_s1 + $0x10] sm:$0xff]   ;;  %481 = vst [vmem:[%s5338_s18] sm:$0xff] %v5325_v11  ;;  %v3814_v15 = vcombine.high %v5325_v11, %v5328_v12  ;;  %483 = vst [vmem:[%s5338_s18 + $0x10] sm:$0xff] %v5331_v13  ;;  %v5352_v17 = vld [vmem:[%s5315_s24 + $0x20] sm:$0xff]  ;;  %s5446_s25 = scalar_lea.vmem %s6439_s1, %s3845_s15  ;;  %v3813_v38 = vcombine.low %v5325_v11, %v5328_v12  ;;  %v3816_v40 = vcombine.high %v5331_v13, %v5347_v16  ;;  %s5545_s16 = scalar_lea.vmem [#allocation3], %s3845_s15 }
  0x11   : > { %4058 = vmatpush3.bf16.msra.mxu0 %v4994_v3  ;;  %v5355_v18 = vld [vmem:[%s5315_s24 + $0x28] sm:$0xff]  ;;  %484 = vst [vmem:[%s5338_s18 + $0x18] sm:$0xff] %v5347_v16  ;;  %485 = vst [vmem:[%s5338_s18 + $0x20] sm:$0xff] %v5352_v17  ;;  %v5367_v20 = vld [vmem:[%s5315_s24 + $0x30] sm:$0xff]  ;;  %v3815_v43 = vcombine.low %v5331_v13, %v5347_v16 }
  0x12   : > { %4059 = vmatprep.subr.bf16.mxu0 %v4995_v4  ;;  %v5003_v19 = vld [vmem:[%s6439_s1 + $0x48] sm:$0xff]   ;;  %486 = vst [vmem:[%s5338_s18 + $0x28] sm:$0xff] %v5355_v18  ;;  %v5370_v21 = vld [vmem:[%s5315_s24 + $0x38] sm:$0xff]  ;;  %v5373_v22 = vld [vmem:[%s5315_s24 + $0x40] sm:$0xff]  ;;  %737 = vmatprep.mubr.bf16.mxu0 %v3814_v15  ;;  %v3818_v44 = vcombine.high %v5352_v17, %v5355_v18  ;;  %v3817_v46 = vcombine.low %v5352_v17, %v5355_v18 }
  0x13   : > { %487 = vst [vmem:[%s5338_s18 + $0x30] sm:$0xff] %v5367_v20  ;;  %488 = vst [vmem:[%s5338_s18 + $0x38] sm:$0xff] %v5370_v21  ;;  %v5380_v23 = vld [vmem:[%s5315_s24 + $0x48] sm:$0xff]  ;;  %v5385_v24 = vld [vmem:[%s5315_s24 + $0x50] sm:$0xff]  ;;  %v3820_v48 = vcombine.high %v5367_v20, %v5370_v21  ;;  %v3819_v52 = vcombine.low %v5367_v20, %v5370_v21 }
  0x14   : > { %489 = vst [vmem:[%s5338_s18 + $0x40] sm:$0xff] %v5373_v22  ;;  %v5388_v25 = vld [vmem:[%s5315_s24 + $0x58] sm:$0xff]  ;;  %490 = vst [vmem:[%s5338_s18 + $0x48] sm:$0xff] %v5380_v23  ;;  %v5397_v26 = vld [vmem:[%s5315_s24 + $0x60] sm:$0xff]  ;;  %v3822_v54 = vcombine.high %v5373_v22, %v5380_v23  ;;  %v3821_v57 = vcombine.low %v5373_v22, %v5380_v23 }
  0x15   : > { %4060 = vmatpush3.bf16.msra.mxu0 %v4996_v5  ;;  %491 = vst [vmem:[%s5338_s18 + $0x50] sm:$0xff] %v5385_v24  ;;  %492 = vst [vmem:[%s5338_s18 + $0x58] sm:$0xff] %v5388_v25  ;;  %v5400_v27 = vld [vmem:[%s5315_s24 + $0x68] sm:$0xff]  ;;  %v5403_v28 = vld [vmem:[%s5315_s24 + $0x70] sm:$0xff]  ;;  %v3824_v59 = vcombine.high %v5385_v24, %v5388_v25  ;;  %v3823_v60 = vcombine.low %v5385_v24, %v5388_v25 }
  0x16   : > { %4061 = vmatprep.subr.bf16.mxu0 %v4997_v6  ;;  %v5004_v29 = vld [vmem:[%s6439_s1 + $0x8] sm:$0xff]   ;;  %493 = vst [vmem:[%s5338_s18 + $0x60] sm:$0xff] %v5397_v26  ;;  %494 = vst [vmem:[%s5338_s18 + $0x68] sm:$0xff] %v5400_v27  ;;  %v5413_v30 = vld [vmem:[%s5315_s24 + $0x78] sm:$0xff]  ;;  %v3826_v61 = vcombine.high %v5397_v26, %v5400_v27  ;;  %v3825_v62 = vcombine.low %v5397_v26, %v5400_v27 }
  0x17   : > { %495 = vst [vmem:[%s5338_s18 + $0x70] sm:$0xff] %v5403_v28  ;;  %496 = vst [vmem:[%s5338_s18 + $0x78] sm:$0xff] %v5413_v30  ;;  %v3827_v31 = vcombine.low %v5403_v28, %v5413_v30  ;;  %v5023_v32 = vld [vmem:[%s6441_s3 + $0x38] sm:$0xff]   ;;  %v5024_v33 = vld [vmem:[%s6441_s3 + $0x30] sm:$0xff]   ;;  %v3828_v63 = vcombine.high %v5403_v28, %v5413_v30 }
  0x18   : > { %v5005_v34 = vld [vmem:[%s6439_s1 + $0x40] sm:$0xff]   ;;  %4631 = vmatprep.subr.bf16.mxu1 %v5023_v32  ;;  %v5025_v35 = vld [vmem:[%s6441_s3 + $0x28] sm:$0xff]   ;;  %v5027_v41 = vld [vmem:[%s6441_s3 + $0x18] sm:$0xff]  }
  0x19   : > { %4062 = vmatpush3.bf16.msra.mxu0 %v4998_v7  ;;  %4632 = vmatpush3.bf16.msra.mxu1 %v5023_v32  ;;  %v5006_v36 = vld [vmem:[%s6439_s1] sm:$0xff]   ;;  %v5028_v42 = vld [vmem:[%s6441_s3 + $0x10] sm:$0xff]   ;;  %v5029_v45 = vld [vmem:[%s6441_s3 + $0x8] sm:$0xff]  }
  0x1a   : > { %4063 = vmatprep.subr.bf16.mxu0 %v4999_v8  ;;  %4633 = vmatprep.subr.bf16.mxu1 %v5024_v33  ;;  %v5026_v37 = vld [vmem:[%s6441_s3 + $0x20] sm:$0xff]   ;;  %v5033_v49 = vld [vmem:[%s6440_s2 + $0x38] sm:$0xff]   ;;  %v5032_v50 = vld [vmem:[%s5446_s25 + $0x8] sm:$0xff]  }
  0x1b   : > { %v5031_v39 = vld [vmem:[%s5446_s25] sm:$0xff]   ;;  %v5035_v51 = vld [vmem:[%s5446_s25 + $0x10] sm:$0xff]   ;;  %v5037_v55 = vld [vmem:[%s6440_s2 + $0x28] sm:$0xff]  }
  0x1c   : > { %4647 = vmatprep.mubr.bf16.mxu1 %v5031_v39  ;;  %v5030_v47 = vld [vmem:[%s6441_s3] sm:$0xff]   ;;  %v5034_v53 = vld [vmem:[%s6440_s2 + $0x30] sm:$0xff]   ;;  %v5036_v56 = vld [vmem:[%s5446_s25 + $0x18] sm:$0xff]  }
  0x1d   : > { %4064 = vmatpush3.bf16.msra.mxu0 %v5000_v9  ;;  %4634 = vmatpush3.bf16.msra.mxu1 %v5024_v33  ;;  %v5038_v58 = vld [vmem:[%s6440_s2 + $0x20] sm:$0xff]   ;;  %v5040_v1 = vld [vmem:[%s5446_s25 + $0x28] sm:$0xff]   ;;  %v5041_v2 = vld [vmem:[%s6440_s2 + $0x18] sm:$0xff]  }
  0x1e   : > { %4065 = vmatprep.subr.bf16.mxu0 %v5001_v10  ;;  %4635 = vmatprep.subr.bf16.mxu1 %v5025_v35  ;;  %v5039_v0 = vld [vmem:[%s5446_s25 + $0x20] sm:$0xff]   ;;  %v5042_v3 = vld [vmem:[%s6440_s2 + $0x10] sm:$0xff]   ;;  %v5044_v5 = vld [vmem:[%s5446_s25 + $0x38] sm:$0xff]  }
  0x1f   : > { %v5043_v4 = vld [vmem:[%s5446_s25 + $0x30] sm:$0xff]   ;;  %v5045_v6 = vld [vmem:[%s6440_s2 + $0x8] sm:$0xff]   ;;  %v5046_v7 = vld [vmem:[%s6440_s2] sm:$0xff]  }
  0x21   : > { %4066 = vmatpush3.bf16.msra.mxu0 %v5002_v14  ;;  %4636 = vmatpush3.bf16.msra.mxu1 %v5025_v35 }
  0x22   : > { %4067 = vmatprep.subr.bf16.mxu0 %v5003_v19  ;;  %4637 = vmatprep.subr.bf16.mxu1 %v5026_v37 }
  0x25   : > { %4068 = vmatpush3.bf16.msra.mxu0 %v5004_v29  ;;  %4638 = vmatpush3.bf16.msra.mxu1 %v5026_v37 }
  0x26   : > { %4069 = vmatprep.subr.bf16.mxu0 %v5005_v34  ;;  %4639 = vmatprep.subr.bf16.mxu1 %v5027_v41 }
  0x29   : > { %4070 = vmatpush3.bf16.msra.mxu0 %v5006_v36  ;;  %4640 = vmatpush3.bf16.msra.mxu1 %v5027_v41 }
  0x2a   : > { %4641 = vmatprep.subr.bf16.mxu1 %v5028_v42 }
  0x2c   : > { %738 = vmatmul.mubr.bf16.vlgmr.msra.gmra.mxu0 %v3813_v38 }
  0x2d   : > { %745 = vmatprep.mubr.bf16.mxu0 %v3816_v40  ;;  %4642 = vmatpush3.bf16.msra.mxu1 %v5028_v42 }
  0x2e   : > { %4643 = vmatprep.subr.bf16.mxu1 %v5029_v45 }
  0x31   : > { %4644 = vmatpush3.bf16.msra.mxu1 %v5029_v45 }
  0x32   : > { %4645 = vmatprep.subr.bf16.mxu1 %v5030_v47 }
  0x34   : > { %746 = vmatmul.mubr.bf16.gmra.mxu0 %v3815_v43 }
  0x35   : > { %753 = vmatprep.mubr.bf16.mxu0 %v3818_v44  ;;  %4646 = vmatpush3.bf16.msra.mxu1 %v5030_v47 }
  0x36   : > { %4663 = vmatprep.subr.bf16.mxu1 %v5033_v49 }
  0x38   : > { %4648 = vmatmul.mubr.bf16.vlgmr.msra.gmra.mxu1 %v5032_v50 }
  0x39   : > { %4664 = vmatpush3.bf16.msra.mxu1 %v5033_v49  ;;  %4651 = vmatprep.mubr.bf16.mxu1 %v5035_v51 }
  0x3a   : > { %4665 = vmatprep.subr.bf16.mxu1 %v5034_v53 }
  0x3c   : > { %754 = vmatmul.mubr.bf16.gmra.mxu0 %v3817_v46 }
  0x3d   : > { %761 = vmatprep.mubr.bf16.mxu0 %v3820_v48  ;;  %4666 = vmatpush3.bf16.msra.mxu1 %v5034_v53 }
  0x3e   : > { %4667 = vmatprep.subr.bf16.mxu1 %v5037_v55 }
  0x40   : > { %4652 = vmatmul.mubr.bf16.gmra.mxu1 %v5036_v56 }
  0x41   : > { %4668 = vmatpush3.bf16.msra.mxu1 %v5037_v55  ;;  %4655 = vmatprep.mubr.bf16.mxu1 %v5039_v0 }
  0x42   : > { %4669 = vmatprep.subr.bf16.mxu1 %v5038_v58 }
  0x44   : > { %762 = vmatmul.mubr.bf16.gmra.mxu0 %v3819_v52 }
  0x45   : > { %769 = vmatprep.mubr.bf16.mxu0 %v3822_v54  ;;  %4670 = vmatpush3.bf16.msra.mxu1 %v5038_v58 }
  0x46   : > { %4671 = vmatprep.subr.bf16.mxu1 %v5041_v2 }
  0x48   : > { %4656 = vmatmul.mubr.bf16.gmra.mxu1 %v5040_v1 }
  0x49   : > { %4672 = vmatpush3.bf16.msra.mxu1 %v5041_v2  ;;  %4659 = vmatprep.mubr.bf16.mxu1 %v5043_v4 }
  0x4a   : > { %4673 = vmatprep.subr.bf16.mxu1 %v5042_v3 }
  0x4c   : > { %770 = vmatmul.mubr.bf16.gmra.mxu0 %v3821_v57 }
  0x4d   : > { %777 = vmatprep.mubr.bf16.mxu0 %v3824_v59  ;;  %4674 = vmatpush3.bf16.msra.mxu1 %v5042_v3 }
  0x4e   : > { %4675 = vmatprep.subr.bf16.mxu1 %v5045_v6 }
  0x50   : > { %4660 = vmatmul.mubr.bf16.gmra.mxu1 %v5044_v5 }
  0x51   : > { %4676 = vmatpush3.bf16.msra.mxu1 %v5045_v6 }
  0x52   : > { %4677 = vmatprep.subr.bf16.mxu1 %v5046_v7 }
  0x54   : > { %778 = vmatmul.mubr.bf16.gmra.mxu0 %v3823_v60 }
  0x55   : > { %785 = vmatprep.mubr.bf16.mxu0 %v3826_v61  ;;  %4678 = vmatpush3.bf16.msra.mxu1 %v5046_v7 }
  0x5c   : > { %786 = vmatmul.mubr.bf16.gmra.mxu0 %v3825_v62 }
  0x5d   : > { %793 = vmatprep.mubr.bf16.mxu0 %v3828_v63 }
  0x64   : > { %794 = vmatmul.mubr.bf16.gmra.mxu0 %v3827_v31 }
  0xec   : > { %v4071_v8 = vpop.f32.mrf.mxu0 }
  0xee   : > { %v4072_v9 = vpop.f32.mrf.mxu0 }
  0xef   : > { %v4073_v12 = vadd.f32 %v4072_v9, %v4071_v8 }
  0xf0   : > { %v4074_v10 = vpop.f32.mrf.mxu0 }
  0xf2   : > { %v4075_v11 = vpop.f32.mrf.mxu0 }
  0xf3   : > { %v4076_v13 = vadd.f32 %v4075_v11, %v4074_v10 }
  0xf4   : > { %v4077_v14 = vpop.f32.mrf.mxu0 }
  0xf5   : > { %v853_v15 = vpack.c.bf16 %v4076_v13, %v4073_v12 }
  0xf6   : > { %v4078_v16 = vpop.f32.mrf.mxu0 }
  0xf7   : > { %4679 = vmatprep.mubr.bf16.mxu1 %v853_v15  ;;  %v4079_v19 = vadd.f32 %v4078_v16, %v4077_v14 }
  0xf8   : > { %v4080_v17 = vpop.f32.mrf.mxu0  ;;  %v4649_v0 = vpop.f32.mrf.mxu1 }
  0xfa   : > { %v4081_v18 = vpop.f32.mrf.mxu0  ;;  %v991_v1 = vpop.f32.mrf.mxu1 }
  0xfb   : > { %v4082_v20 = vadd.f32 %v4081_v18, %v4080_v17  ;;  %v5537_v18 = vld [vmem:[%s6442_s4] ss:$0 sm:$0xff] }
  0xfc   : > { %v4083_v21 = vpop.f32.mrf.mxu0  ;;  %v4650_v2 = vpop.f32.mrf.mxu1 }
  0xfd   : > { %v854_v22 = vpack.c.bf16 %v4082_v20, %v4079_v19 }
  0xfe   : > { %v4084_v23 = vpop.f32.mrf.mxu0  ;;  %v994_v3 = vpop.f32.mrf.mxu1 }
  0xff   : > { %4680 = vmatmul.mubr.bf16.vlgmr.msra.gmra.mxu1 %v854_v22  ;;  %v4085_v26 = vadd.f32 %v4084_v23, %v4083_v21 }
 0x100   : > { %v4086_v24 = vpop.f32.mrf.mxu0  ;;  %v4653_v4 = vpop.f32.mrf.mxu1 }
 0x102   : > { %v4087_v25 = vpop.f32.mrf.mxu0  ;;  %v1007_v5 = vpop.f32.mrf.mxu1 }
 0x103   : > { %v4088_v27 = vadd.f32 %v4087_v25, %v4086_v24 }
 0x104   : > { %v4089_v28 = vpop.f32.mrf.mxu0  ;;  %v4654_v6 = vpop.f32.mrf.mxu1 }
 0x105   : > { %v855_v29 = vpack.c.bf16 %v4088_v27, %v4085_v26 }
 0x106   : > { %v4090_v30 = vpop.f32.mrf.mxu0  ;;  %v1010_v7 = vpop.f32.mrf.mxu1 }
 0x107   : > { %4683 = vmatprep.mubr.bf16.mxu1 %v855_v29  ;;  %v4091_v33 = vadd.f32 %v4090_v30, %v4089_v28 }
 0x108   : > { %v4092_v31 = vpop.f32.mrf.mxu0  ;;  %v4657_v8 = vpop.f32.mrf.mxu1 }
 0x10a   : > { %v4093_v32 = vpop.f32.mrf.mxu0  ;;  %v1023_v9 = vpop.f32.mrf.mxu1 }
 0x10b   : > { %v4094_v34 = vadd.f32 %v4093_v32, %v4092_v31 }
 0x10c   : > { %v4095_v35 = vpop.f32.mrf.mxu0  ;;  %v4658_v10 = vpop.f32.mrf.mxu1 }
 0x10d   : > { %v856_v36 = vpack.c.bf16 %v4094_v34, %v4091_v33 }
 0x10e   : > { %v4096_v37 = vpop.f32.mrf.mxu0  ;;  %v1026_v11 = vpop.f32.mrf.mxu1 }
 0x10f   : > { %4684 = vmatmul.mubr.bf16.gmra.mxu1 %v856_v36  ;;  %v4097_v40 = vadd.f32 %v4096_v37, %v4095_v35 }
 0x110   : > { %v4098_v38 = vpop.f32.mrf.mxu0  ;;  %v5526_v12 = vpop.f32.mrf.mxu1 }
 0x112   : > { %v4099_v39 = vpop.f32.mrf.mxu0  ;;  %v5528_v13 = vpop.f32.mrf.mxu1 }
 0x113   : > { %v4100_v41 = vadd.f32 %v4099_v39, %v4098_v38 }
 0x114   : > { %v4101_v42 = vpop.f32.mrf.mxu0  ;;  %v5530_v14 = vpop.f32.mrf.mxu1 }
 0x115   : > { %v857_v43 = vpack.c.bf16 %v4100_v41, %v4097_v40 }
 0x116   : > { %v4102_v44 = vpop.f32.mrf.mxu0  ;;  %v5532_v15 = vpop.f32.mrf.mxu1 }
 0x117   : > { %4687 = vmatprep.mubr.bf16.mxu1 %v857_v43  ;;  %v4103_v47 = vadd.f32 %v4102_v44, %v4101_v42 }
 0x118   : > { %v4104_v45 = vpop.f32.mrf.mxu0 }
 0x11a   : > { %v4105_v46 = vpop.f32.mrf.mxu0 }
 0x11b   : > { %v4106_v48 = vadd.f32 %v4105_v46, %v4104_v45 }
 0x11c   : > { %v4107_v49 = vpop.f32.mrf.mxu0 }
 0x11d   : > { %v858_v50 = vpack.c.bf16 %v4106_v48, %v4103_v47 }
 0x11e   : > { %v4108_v51 = vpop.f32.mrf.mxu0 }
 0x11f   : > { %4688 = vmatmul.mubr.bf16.gmra.mxu1 %v858_v50  ;;  %v4109_v54 = vadd.f32 %v4108_v51, %v4107_v49 }
 0x120   : > { %v4110_v52 = vpop.f32.mrf.mxu0 }
 0x122   : > { %v4111_v53 = vpop.f32.mrf.mxu0 }
 0x123   : > { %v4112_v55 = vadd.f32 %v4111_v53, %v4110_v52 }
 0x124   : > { %v4113_v56 = vpop.f32.mrf.mxu0 }
 0x125   : > { %v859_v57 = vpack.c.bf16 %v4112_v55, %v4109_v54 }
 0x126   : > { %v4114_v58 = vpop.f32.mrf.mxu0 }
 0x127   : > { %4691 = vmatprep.mubr.bf16.mxu1 %v859_v57  ;;  %v4115_v61 = vadd.f32 %v4114_v58, %v4113_v56 }
 0x128   : > { %v4116_v59 = vpop.f32.mrf.mxu0 }
 0x12a   : > { %v4117_v60 = vpop.f32.mrf.mxu0 }
 0x12b   : > { %v4118_v62 = vadd.f32 %v4117_v60, %v4116_v59 }
 0x12d   : > { %v860_v63 = vpack.c.bf16 %v4118_v62, %v4115_v61 }
 0x12f   : > { %4692 = vmatmul.mubr.bf16.gmra.mxu1 %v860_v63 }
 0x1bf   : > { %v4681_v16 = vpop.f32.mrf.mxu1 }
 0x1c0   : > { %v1145_v17 = vadd.f32 %v4681_v16, %v4649_v0 }
 0x1c1   : > { %v1136_v19 = vpop.f32.mrf.mxu1 }
 0x1c2   : > { %v1137_v20 = vadd.f32 %v1136_v19, %v991_v1  ;;  %v1207_v22 = vadd.f32 %v5537_v18, %v1145_v17 }
 0x1c3   : > { %v4682_v21 = vpop.f32.mrf.mxu1 }
 0x1c4   : > { %v1148_v23 = vadd.f32 %v4682_v21, %v4650_v2  ;;  %v1205_v25 = vadd.f32 %v5537_v18, %v1137_v20  ;;  %v1223_v28 = vmax.f32 %v1207_v22, 0.0 }
 0x1c5   : > { %v1139_v24 = vpop.f32.mrf.mxu1 }
 0x1c6   : > { %v1208_v26 = vadd.f32 %v5537_v18, %v1148_v23  ;;  %v1140_v27 = vadd.f32 %v1139_v24, %v994_v3  ;;  %v1221_v31 = vmax.f32 %v1205_v25, 0.0 }
 0x1c8   : > { %v1224_v29 = vmax.f32 %v1208_v26, 0.0  ;;  %v1206_v30 = vadd.f32 %v5537_v18, %v1140_v27 }
 0x1ca   : > { %v4016_v32 = vpack.c.bf16 %v1224_v29, %v1223_v28  ;;  %v1222_v33 = vmax.f32 %v1206_v30, 0.0 }
 0x1cc   : > { %4048 = vst [vmem:[%s5545_s16 + $0x8] sm:$0xff] %v4016_v32   ;;  %v4011_v34 = vpack.c.bf16 %v1222_v33, %v1221_v31 }
 0x1ce   : > { %4012 = vst [vmem:[%s5545_s16] sm:$0xff] %v4011_v34  }
 0x1cf   : > { %v4685_v35 = vpop.f32.mrf.mxu1 }
 0x1d0   : > { %v1161_v36 = vadd.f32 %v4685_v35, %v4653_v4 }
 0x1d1   : > { %v1152_v37 = vpop.f32.mrf.mxu1 }
 0x1d2   : > { %v1153_v38 = vadd.f32 %v1152_v37, %v1007_v5  ;;  %v1211_v40 = vadd.f32 %v5537_v18, %v1161_v36 }
 0x1d3   : > { %v4686_v39 = vpop.f32.mrf.mxu1 }
 0x1d4   : > { %v1164_v41 = vadd.f32 %v4686_v39, %v4654_v6  ;;  %v1209_v43 = vadd.f32 %v5537_v18, %v1153_v38  ;;  %v1227_v46 = vmax.f32 %v1211_v40, 0.0 }
 0x1d5   : > { %v1155_v42 = vpop.f32.mrf.mxu1 }
 0x1d6   : > { %v1212_v44 = vadd.f32 %v5537_v18, %v1164_v41  ;;  %v1156_v45 = vadd.f32 %v1155_v42, %v1010_v7  ;;  %v1225_v49 = vmax.f32 %v1209_v43, 0.0 }
 0x1d8   : > { %v1228_v47 = vmax.f32 %v1212_v44, 0.0  ;;  %v1210_v48 = vadd.f32 %v5537_v18, %v1156_v45 }
 0x1da   : > { %v4026_v50 = vpack.c.bf16 %v1228_v47, %v1227_v46  ;;  %v1226_v51 = vmax.f32 %v1210_v48, 0.0 }
 0x1dc   : > { %4050 = vst [vmem:[%s5545_s16 + $0x18] sm:$0xff] %v4026_v50   ;;  %v4021_v52 = vpack.c.bf16 %v1226_v51, %v1225_v49 }
 0x1de   : > { %4049 = vst [vmem:[%s5545_s16 + $0x10] sm:$0xff] %v4021_v52  }
 0x1df   : > { %v4689_v53 = vpop.f32.mrf.mxu1 }
 0x1e0   : > { %v1177_v54 = vadd.f32 %v4689_v53, %v4657_v8 }
 0x1e1   : > { %v1168_v55 = vpop.f32.mrf.mxu1 }
 0x1e2   : > { %v1169_v56 = vadd.f32 %v1168_v55, %v1023_v9  ;;  %v1215_v58 = vadd.f32 %v5537_v18, %v1177_v54 }
 0x1e3   : > { %v4690_v57 = vpop.f32.mrf.mxu1 }
 0x1e4   : > { %v1180_v59 = vadd.f32 %v4690_v57, %v4658_v10  ;;  %v1213_v61 = vadd.f32 %v5537_v18, %v1169_v56  ;;  %v1231_v0 = vmax.f32 %v1215_v58, 0.0 }
 0x1e5   : > { %v1171_v60 = vpop.f32.mrf.mxu1 }
 0x1e6   : > { %v1216_v62 = vadd.f32 %v5537_v18, %v1180_v59  ;;  %v1172_v63 = vadd.f32 %v1171_v60, %v1026_v11  ;;  %v1229_v3 = vmax.f32 %v1213_v61, 0.0 }
 0x1e8   : > { %v1232_v1 = vmax.f32 %v1216_v62, 0.0  ;;  %v1214_v2 = vadd.f32 %v5537_v18, %v1172_v63 }
 0x1ea   : > { %v4036_v4 = vpack.c.bf16 %v1232_v1, %v1231_v0  ;;  %v1230_v5 = vmax.f32 %v1214_v2, 0.0 }
 0x1ec   : > { %4052 = vst [vmem:[%s5545_s16 + $0x28] sm:$0xff] %v4036_v4   ;;  %v4031_v6 = vpack.c.bf16 %v1230_v5, %v1229_v3 }
 0x1ee   : > { %4051 = vst [vmem:[%s5545_s16 + $0x20] sm:$0xff] %v4031_v6  }
 0x1ef   : > { %v4693_v7 = vpop.f32.mrf.mxu1 }
 0x1f0   : > { %v1193_v8 = vadd.f32 %v4693_v7, %v5526_v12 }
 0x1f1   : > { %v1184_v9 = vpop.f32.mrf.mxu1 }
 0x1f2   : > { %v1185_v10 = vadd.f32 %v1184_v9, %v5528_v13  ;;  %v1219_v11 = vadd.f32 %v5537_v18, %v1193_v8 }
 0x1f3   : > { %v4694_v16 = vpop.f32.mrf.mxu1 }
 0x1f4   : > { %v1196_v17 = vadd.f32 %v4694_v16, %v5530_v14  ;;  %v1217_v20 = vadd.f32 %v5537_v18, %v1185_v10  ;;  %v1235_v23 = vmax.f32 %v1219_v11, 0.0 }
 0x1f5   : > { %v1187_v19 = vpop.f32.mrf.mxu1 }
 0x1f6   : > { %v1220_v21 = vadd.f32 %v5537_v18, %v1196_v17  ;;  %v1188_v22 = vadd.f32 %v1187_v19, %v5532_v15  ;;  %v1233_v25 = vmax.f32 %v1217_v20, 0.0 }
 0x1f8   : > { %v1236_v24 = vmax.f32 %v1220_v21, 0.0  ;;  %v1218_v12 = vadd.f32 %v5537_v18, %v1188_v22 }
 0x1fa   : > { %v4046_v26 = vpack.c.bf16 %v1236_v24, %v1235_v23  ;;  %v1234_v13 = vmax.f32 %v1218_v12, 0.0  ;;  %1322 = sbr.rel (%p3888_p4) target bundleno = 2197 (0x895), region = 80 }
 0x1fc   : > { %4054 = vst [vmem:[%s5545_s16 + $0x38] sm:$0xff] %v4046_v26   ;;  %v4041_v27 = vpack.c.bf16 %v1234_v13, %v1233_v25 }
 0x1fe   : > { %4053 = vst [vmem:[%s5545_s16 + $0x30] sm:$0xff] %v4041_v27  }
 0x1ff   : > { %v5603_v37 = vld [vmem:[#allocation2 + $0x4] ss:$8 sps:$4 sm:$0xff]   ;;  %v5065_v42 = vld [vmem:[#allocation2] ss:$8 sps:$4 sm:$0xff]   ;;  %v5066_v43 = vld [vmem:[#allocation2 + $0x14] ss:$8 sps:$4 sm:$0xff]  }
 0x200   : > { %1708 = vmatprep.mubr.bf16.mxu0 %v5603_v37  ;;  %v5108_v44 = vld [vmem:[%s6444_s6 + $0x38] sm:$0xff]   ;;  %v5109_v45 = vld [vmem:[%s6444_s6 + $0x30] sm:$0xff]   ;;  %v5069_v47 = vld [vmem:[#allocation2 + $0x24] ss:$8 sps:$4 sm:$0xff]  }
 0x201   : > { %v5068_v46 = vld [vmem:[#allocation2 + $0x10] ss:$8 sps:$4 sm:$0xff]   ;;  %4695 = vmatprep.subr.bf16.mxu1 %v5108_v44  ;;  %v5113_v48 = vld [vmem:[%s6444_s6 + $0x28] sm:$0xff]   ;;  %v5114_v49 = vld [vmem:[%s6444_s6 + $0x20] sm:$0xff]  }
 0x202   : > { %4696 = vmatpush3.bf16.msra.mxu1 %v5108_v44  ;;  %v5071_v50 = vld [vmem:[#allocation2 + $0x20] ss:$8 sps:$4 sm:$0xff]   ;;  %v5072_v51 = vld [vmem:[#allocation2 + $0x34] ss:$8 sps:$4 sm:$0xff]   ;;  %v5074_v54 = vld [vmem:[#allocation2 + $0x30] ss:$8 sps:$4 sm:$0xff]  }
 0x203   : > { %4697 = vmatprep.subr.bf16.mxu1 %v5109_v45  ;;  %v5115_v52 = vld [vmem:[%s6444_s6 + $0x18] sm:$0xff]   ;;  %v5116_v53 = vld [vmem:[%s6444_s6 + $0x10] sm:$0xff]   ;;  %v5075_v55 = vld [vmem:[#allocation2 + $0x44] ss:$8 sps:$4 sm:$0xff]  }
 0x204   : > { %v5117_v56 = vld [vmem:[%s6444_s6 + $0x8] sm:$0xff]   ;;  %v5118_v57 = vld [vmem:[%s6444_s6] sm:$0xff]   ;;  %v5640_v59 = vld [vmem:[#allocation2 + $0x54] ss:$8 sps:$4 sm:$0xff]  }
 0x205   : > { %v5572_v14 = vld [vmem:[#allocation3 + $0x78] sm:$0xff]   ;;  %v5577_v15 = vld [vmem:[#allocation3 + $0x70] sm:$0xff]   ;;  %v5583_v29 = vld [vmem:[#allocation3 + $0x68] sm:$0xff]  }
 0x206   : > { %v5574_v28 = vld [vmem:[#allocation3 + $0x38] sm:$0xff]   ;;  %4151 = vmatprep.subr.bf16.mxu0 %v5572_v14  ;;  %v5580_v18 = vld [vmem:[#allocation3 + $0x30] sm:$0xff]   ;;  %v5586_v30 = vld [vmem:[#allocation3 + $0x28] sm:$0xff]   ;;  %4698 = vmatpush3.bf16.msra.mxu1 %v5109_v45 }
 0x207   : > { %4152 = vmatpush3.bf16.msra.mxu0 %v5574_v28  ;;  %v5589_v31 = vld [vmem:[#allocation3 + $0x60] sm:$0xff]   ;;  %v5595_v33 = vld [vmem:[#allocation3 + $0x58] sm:$0xff]   ;;  %v5599_v35 = vld [vmem:[#allocation3 + $0x50] sm:$0xff]   ;;  %4699 = vmatprep.subr.bf16.mxu1 %v5113_v48 }
 0x208   : > { %4153 = vmatprep.subr.bf16.mxu0 %v5577_v15  ;;  %v5592_v32 = vld [vmem:[#allocation3 + $0x20] sm:$0xff]   ;;  %v5597_v34 = vld [vmem:[#allocation3 + $0x18] sm:$0xff]   ;;  %v5058_v38 = vld [vmem:[#allocation3 + $0x10] sm:$0xff]  }
 0x209   : > { %v5062_v36 = vld [vmem:[#allocation3] sm:$0xff]   ;;  %v5608_v39 = vld [vmem:[#allocation3 + $0x48] sm:$0xff]   ;;  %v5119_v60 = vld [vmem:[%s6443_s5 + $0x38] sm:$0xff]  }
 0x20a   : > { %4711 = vmatprep.mubr.bf16.mxu1 %v5062_v36  ;;  %v5060_v40 = vld [vmem:[#allocation3 + $0x8] sm:$0xff]   ;;  %v5611_v41 = vld [vmem:[#allocation3 + $0x40] sm:$0xff]   ;;  %4700 = vmatpush3.bf16.msra.mxu1 %v5113_v48  ;;  %v5120_v61 = vld [vmem:[%s6443_s5 + $0x30] sm:$0xff]  }
 0x20b   : > { %4154 = vmatpush3.bf16.msra.mxu0 %v5580_v18  ;;  %4701 = vmatprep.subr.bf16.mxu1 %v5114_v49  ;;  %v5638_v58 = vld [vmem:[#allocation2 + $0x40] ss:$8 sps:$4 sm:$0xff]   ;;  %v5650_v62 = vld [vmem:[#allocation2 + $0x50] ss:$8 sps:$4 sm:$0xff]   ;;  %v5652_v63 = vld [vmem:[#allocation2 + $0x64] ss:$8 sps:$4 sm:$0xff]  }
 0x20c   : > { %4155 = vmatprep.subr.bf16.mxu0 %v5583_v29  ;;  %v5121_v0 = vld [vmem:[%s6443_s5 + $0x28] sm:$0xff]   ;;  %v5122_v1 = vld [vmem:[%s6443_s5 + $0x20] sm:$0xff]   ;;  %v5665_v3 = vld [vmem:[#allocation2 + $0x74] ss:$8 sps:$4 sm:$0xff]  }
 0x20d   : > { %v5662_v2 = vld [vmem:[#allocation2 + $0x60] ss:$8 sps:$4 sm:$0xff]   ;;  %v5670_v4 = vld [vmem:[#allocation2 + $0x70] ss:$8 sps:$4 sm:$0xff]   ;;  %v5673_v5 = vld [vmem:[#allocation2 + $0x84] ss:$8 sps:$4 sm:$0xff]  }
 0x20e   : > { %4702 = vmatpush3.bf16.msra.mxu1 %v5114_v49  ;;  %v5678_v6 = vld [vmem:[#allocation2 + $0x80] ss:$8 sps:$4 sm:$0xff]   ;;  %v5681_v7 = vld [vmem:[#allocation2 + $0x94] ss:$8 sps:$4 sm:$0xff]   ;;  %v5689_v9 = vld [vmem:[#allocation2 + $0x90] ss:$8 sps:$4 sm:$0xff]  }
 0x20f   : > { %4156 = vmatpush3.bf16.msra.mxu0 %v5586_v30  ;;  %4703 = vmatprep.subr.bf16.mxu1 %v5115_v52  ;;  %v5123_v8 = vld [vmem:[%s6443_s5 + $0x18] sm:$0xff]   ;;  %v5692_v10 = vld [vmem:[#allocation2 + $0xa4] ss:$8 sps:$4 sm:$0xff]   ;;  %v5124_v16 = vld [vmem:[%s6443_s5 + $0x10] sm:$0xff]  }
 0x210   : > { %4157 = vmatprep.subr.bf16.mxu0 %v5589_v31  ;;  %v5125_v11 = vld [vmem:[%s6443_s5 + $0x8] sm:$0xff]   ;;  %v5706_v19 = vld [vmem:[#allocation2 + $0xb4] ss:$8 sps:$4 sm:$0xff]   ;;  %v5126_v20 = vld [vmem:[%s6443_s5] sm:$0xff]  }
 0x211   : > { %v5703_v17 = vld [vmem:[#allocation2 + $0xa0] ss:$8 sps:$4 sm:$0xff]   ;;  %v5714_v21 = vld [vmem:[#allocation2 + $0xb0] ss:$8 sps:$4 sm:$0xff]   ;;  %v5717_v22 = vld [vmem:[#allocation2 + $0xc4] ss:$8 sps:$4 sm:$0xff]  }
 0x212   : > { %4704 = vmatpush3.bf16.msra.mxu1 %v5115_v52  ;;  %v5722_v23 = vld [vmem:[#allocation2 + $0xc0] ss:$8 sps:$4 sm:$0xff]   ;;  %v5725_v24 = vld [vmem:[#allocation2 + $0xd4] ss:$8 sps:$4 sm:$0xff]   ;;  %v5729_v12 = vld [vmem:[#allocation2 + $0xd0] ss:$8 sps:$4 sm:$0xff]  }
 0x213   : > { %4158 = vmatpush3.bf16.msra.mxu0 %v5592_v32  ;;  %4705 = vmatprep.subr.bf16.mxu1 %v5116_v53  ;;  %6459 = vst [vmem:[#allocation4_spill] sm:$0xff] %v5725_v24  ;;  %6460 = vst [vmem:[#allocation5_spill] sm:$0xff] %v5729_v12  ;;  %v5731_v25 = vld [vmem:[#allocation2 + $0xe4] ss:$8 sps:$4 sm:$0xff]   ;;  %v5735_v26 = vld [vmem:[#allocation2 + $0xe0] ss:$8 sps:$4 sm:$0xff]  }
 0x214   : > { %4159 = vmatprep.subr.bf16.mxu0 %v5595_v33  ;;  %6461 = vst [vmem:[#allocation6_spill] sm:$0xff] %v5731_v25  ;;  %6462 = vst [vmem:[#allocation7_spill] sm:$0xff] %v5735_v26  ;;  %v5737_v13 = vld [vmem:[#allocation2 + $0xf4] ss:$8 sps:$4 sm:$0xff]   ;;  %v5741_v27 = vld [vmem:[#allocation2 + $0xf0] ss:$8 sps:$4 sm:$0xff]  }
 0x215   : > { %6463 = vst [vmem:[#allocation8_spill] sm:$0xff] %v5737_v13  ;;  %6464 = vst [vmem:[#allocation9_spill] sm:$0xff] %v5741_v27  ;;  %v5129_v44 = vld [vmem:[%s6447_s9 + $0x28] sm:$0xff]  }
 0x216   : > { %4706 = vmatpush3.bf16.msra.mxu1 %v5116_v53 }
 0x217   : > { %4160 = vmatpush3.bf16.msra.mxu0 %v5597_v34  ;;  %4707 = vmatprep.subr.bf16.mxu1 %v5117_v56 }
 0x218   : > { %4161 = vmatprep.subr.bf16.mxu0 %v5599_v35 }
 0x21a   : > { %4708 = vmatpush3.bf16.msra.mxu1 %v5117_v56 }
 0x21b   : > { %4162 = vmatpush3.bf16.msra.mxu0 %v5058_v38  ;;  %4709 = vmatprep.subr.bf16.mxu1 %v5118_v57 }
 0x21c   : > { %4163 = vmatprep.subr.bf16.mxu0 %v5608_v39 }
 0x21e   : > { %4710 = vmatpush3.bf16.msra.mxu1 %v5118_v57 }
 0x21f   : > { %4164 = vmatpush3.bf16.msra.mxu0 %v5060_v40  ;;  %4743 = vmatprep.subr.bf16.mxu1 %v5119_v60 }
 0x220   : > { %4165 = vmatprep.subr.bf16.mxu0 %v5611_v41 }
 0x221   : > { %4712 = vmatmul.mubr.bf16.vlgmr.msra.gmra.mxu1 %v5060_v40 }
 0x222   : > { %4715 = vmatprep.mubr.bf16.mxu1 %v5058_v38  ;;  %4744 = vmatpush3.bf16.msra.mxu1 %v5119_v60 }
 0x223   : > { %4166 = vmatpush3.bf16.msra.mxu0 %v5062_v36  ;;  %4745 = vmatprep.subr.bf16.mxu1 %v5120_v61 }
 0x226   : > { %1709 = vmatmul.mubr.bf16.vlgmr.msra.gmra.mxu0 %v5065_v42  ;;  %4746 = vmatpush3.bf16.msra.mxu1 %v5120_v61 }
 0x227   : > { %1716 = vmatprep.mubr.bf16.mxu0 %v5066_v43  ;;  %4747 = vmatprep.subr.bf16.mxu1 %v5121_v0 }
 0x229   : > { %4716 = vmatmul.mubr.bf16.gmra.mxu1 %v5597_v34 }
 0x22a   : > { %4719 = vmatprep.mubr.bf16.mxu1 %v5592_v32  ;;  %4748 = vmatpush3.bf16.msra.mxu1 %v5121_v0 }
 0x22b   : > { %4749 = vmatprep.subr.bf16.mxu1 %v5122_v1 }
 0x22e   : > { %1717 = vmatmul.mubr.bf16.gmra.mxu0 %v5068_v46  ;;  %4750 = vmatpush3.bf16.msra.mxu1 %v5122_v1 }
 0x22f   : > { %1724 = vmatprep.mubr.bf16.mxu0 %v5069_v47  ;;  %4751 = vmatprep.subr.bf16.mxu1 %v5123_v8 }
 0x231   : > { %4720 = vmatmul.mubr.bf16.gmra.mxu1 %v5586_v30 }
 0x232   : > { %4723 = vmatprep.mubr.bf16.mxu1 %v5580_v18  ;;  %4752 = vmatpush3.bf16.msra.mxu1 %v5123_v8 }
 0x233   : > { %4753 = vmatprep.subr.bf16.mxu1 %v5124_v16 }
 0x236   : > { %1725 = vmatmul.mubr.bf16.gmra.mxu0 %v5071_v50  ;;  %4754 = vmatpush3.bf16.msra.mxu1 %v5124_v16  ;;  %v5130_v50 = vld [vmem:[%s6447_s9 + $0x20] sm:$0xff]  }
 0x237   : > { %1732 = vmatprep.mubr.bf16.mxu0 %v5072_v51  ;;  %4755 = vmatprep.subr.bf16.mxu1 %v5125_v11 }
 0x239   : > { %4724 = vmatmul.mubr.bf16.gmra.mxu1 %v5574_v28 }
 0x23a   : > { %4727 = vmatprep.mubr.bf16.mxu1 %v5611_v41  ;;  %4756 = vmatpush3.bf16.msra.mxu1 %v5125_v11  ;;  %v5128_v41 = vld [vmem:[%s6447_s9 + $0x30] sm:$0xff]  }
 0x23b   : > { %4757 = vmatprep.subr.bf16.mxu1 %v5126_v20 }
 0x23e   : > { %1733 = vmatmul.mubr.bf16.gmra.mxu0 %v5074_v54  ;;  %4758 = vmatpush3.bf16.msra.mxu1 %v5126_v20 }
 0x23f   : > { %1740 = vmatprep.mubr.bf16.mxu0 %v5075_v55 }
 0x241   : > { %4728 = vmatmul.mubr.bf16.gmra.mxu1 %v5608_v39 }
 0x242   : > { %4731 = vmatprep.mubr.bf16.mxu1 %v5599_v35 }
 0x246   : > { %1741 = vmatmul.mubr.bf16.gmra.mxu0 %v5638_v58 }
 0x247   : > { %1748 = vmatprep.mubr.bf16.mxu0 %v5640_v59 }
 0x249   : > { %4732 = vmatmul.mubr.bf16.gmra.mxu1 %v5595_v33 }
 0x24a   : > { %4735 = vmatprep.mubr.bf16.mxu1 %v5589_v31 }
 0x24e   : > { %1749 = vmatmul.mubr.bf16.gmra.mxu0 %v5650_v62 }
 0x24f   : > { %1756 = vmatprep.mubr.bf16.mxu0 %v5652_v63 }
 0x251   : > { %4736 = vmatmul.mubr.bf16.gmra.mxu1 %v5583_v29 }
 0x252   : > { %4739 = vmatprep.mubr.bf16.mxu1 %v5577_v15  ;;  %v5127_v15 = vld [vmem:[%s6447_s9 + $0x38] sm:$0xff]  }
 0x253   : > { %4791 = vmatprep.subr.bf16.mxu1 %v5127_v15 }
 0x256   : > { %1757 = vmatmul.mubr.bf16.gmra.mxu0 %v5662_v2 }
 0x257   : > { %1764 = vmatprep.mubr.bf16.mxu0 %v5665_v3 }
 0x259   : > { %4740 = vmatmul.mubr.bf16.gmra.mxu1 %v5572_v14 }
 0x25e   : > { %1765 = vmatmul.mubr.bf16.gmra.mxu0 %v5670_v4 }
 0x25f   : > { %1772 = vmatprep.mubr.bf16.mxu0 %v5673_v5 }
 0x266   : > { %1773 = vmatmul.mubr.bf16.gmra.mxu0 %v5678_v6 }
 0x267   : > { %1780 = vmatprep.mubr.bf16.mxu0 %v5681_v7 }
 0x26e   : > { %1781 = vmatmul.mubr.bf16.gmra.mxu0 %v5689_v9 }
 0x26f   : > { %1788 = vmatprep.mubr.bf16.mxu0 %v5692_v10 }
 0x276   : > { %1789 = vmatmul.mubr.bf16.gmra.mxu0 %v5703_v17 }
 0x277   : > { %1796 = vmatprep.mubr.bf16.mxu0 %v5706_v19 }
 0x27e   : > { %1797 = vmatmul.mubr.bf16.gmra.mxu0 %v5714_v21 }
 0x27f   : > { %1804 = vmatprep.mubr.bf16.mxu0 %v5717_v22 }
 0x286   : > { %1805 = vmatmul.mubr.bf16.gmra.mxu0 %v5722_v23 }
 0x287   : > { %1812 = vmatprep.mubr.bf16.mxu0 %v5725_v24 }
 0x28e   : > { %1813 = vmatmul.mubr.bf16.gmra.mxu0 %v5729_v12 }
 0x28f   : > { %1820 = vmatprep.mubr.bf16.mxu0 %v5731_v25 }
 0x296   : > { %1821 = vmatmul.mubr.bf16.gmra.mxu0 %v5735_v26 }
 0x297   : > { %1828 = vmatprep.mubr.bf16.mxu0 %v5737_v13 }
 0x29e   : > { %1829 = vmatmul.mubr.bf16.gmra.mxu0 %v5741_v27 }
 0x29f   : > { %2422 = vmatprep.mubr.bf16.mxu0 %v5603_v37 }
 0x2e6   : > { %v4167_v14 = vpop.f32.mrf.mxu0 }
 0x2e8   : > { %v4168_v28 = vpop.f32.mrf.mxu0 }
 0x2e9   : > { %v4169_v30 = vadd.f32 %v4168_v28, %v4167_v14 }
 0x2ea   : > { %v4170_v18 = vpop.f32.mrf.mxu0 }
 0x2ec   : > { %v4171_v29 = vpop.f32.mrf.mxu0 }
 0x2ed   : > { %v4172_v31 = vadd.f32 %v4171_v29, %v4170_v18 }
 0x2ee   : > { %v4173_v32 = vpop.f32.mrf.mxu0 }
 0x2ef   : > { %v1837_v33 = vpack.c.bf16 %v4172_v31, %v4169_v30 }
 0x2f0   : > { %v4174_v34 = vpop.f32.mrf.mxu0 }
 0x2f1   : > { %4759 = vmatprep.mubr.bf16.mxu1 %v1837_v33  ;;  %v4175_v38 = vadd.f32 %v4174_v34, %v4173_v32 }
 0x2f2   : > { %v4176_v35 = vpop.f32.mrf.mxu0 }
 0x2f4   : > { %v4177_v36 = vpop.f32.mrf.mxu0 }
 0x2f5   : > { %v4178_v39 = vadd.f32 %v4177_v36, %v4176_v35 }
 0x2f6   : > { %v4179_v37 = vpop.f32.mrf.mxu0 }
 0x2f7   : > { %v1838_v40 = vpack.c.bf16 %v4178_v39, %v4175_v38 }
 0x2f8   : > { %v4180_v42 = vpop.f32.mrf.mxu0 }
 0x2f9   : > { %4760 = vmatmul.mubr.bf16.vlgmr.msra.gmra.mxu1 %v1838_v40  ;;  %v4181_v46 = vadd.f32 %v4180_v42, %v4179_v37 }
 0x2fa   : > { %v4182_v43 = vpop.f32.mrf.mxu0  ;;  %4792 = vmatpush3.bf16.msra.mxu1 %v5127_v15 }
 0x2fb   : > { %4793 = vmatprep.subr.bf16.mxu1 %v5128_v41 }
 0x2fc   : > { %v4183_v45 = vpop.f32.mrf.mxu0 }
 0x2fd   : > { %v4184_v47 = vadd.f32 %v4183_v45, %v4182_v43 }
 0x2fe   : > { %v4185_v48 = vpop.f32.mrf.mxu0  ;;  %4794 = vmatpush3.bf16.msra.mxu1 %v5128_v41 }
 0x2ff   : > { %v1839_v49 = vpack.c.bf16 %v4184_v47, %v4181_v46  ;;  %4795 = vmatprep.subr.bf16.mxu1 %v5129_v44 }
 0x300   : > { %v4186_v51 = vpop.f32.mrf.mxu0 }
 0x301   : > { %4763 = vmatprep.mubr.bf16.mxu1 %v1839_v49  ;;  %v4187_v54 = vadd.f32 %v4186_v51, %v4185_v48 }
 0x302   : > { %v4188_v52 = vpop.f32.mrf.mxu0  ;;  %4796 = vmatpush3.bf16.msra.mxu1 %v5129_v44 }
 0x303   : > { %4797 = vmatprep.subr.bf16.mxu1 %v5130_v50 }
 0x304   : > { %v4189_v53 = vpop.f32.mrf.mxu0 }
 0x305   : > { %v4190_v55 = vadd.f32 %v4189_v53, %v4188_v52 }
 0x306   : > { %v4191_v56 = vpop.f32.mrf.mxu0  ;;  %4798 = vmatpush3.bf16.msra.mxu1 %v5130_v50 }
 0x307   : > { %v1840_v57 = vpack.c.bf16 %v4190_v55, %v4187_v54 }
 0x308   : > { %v4192_v60 = vpop.f32.mrf.mxu0 }
 0x309   : > { %4764 = vmatmul.mubr.bf16.gmra.mxu1 %v1840_v57  ;;  %v4193_v1 = vadd.f32 %v4192_v60, %v4191_v56 }
 0x30a   : > { %v4194_v61 = vpop.f32.mrf.mxu0 }
 0x30c   : > { %v4195_v0 = vpop.f32.mrf.mxu0 }
 0x30d   : > { %v4196_v8 = vadd.f32 %v4195_v0, %v4194_v61  ;;  %v5131_v61 = vld [vmem:[%s6447_s9 + $0x18] sm:$0xff]  }
 0x30e   : > { %v4197_v16 = vpop.f32.mrf.mxu0  ;;  %4799 = vmatprep.subr.bf16.mxu1 %v5131_v61 }
 0x30f   : > { %v1841_v11 = vpack.c.bf16 %v4196_v8, %v4193_v1  ;;  %v5760_v1 = vpop.f32.mrf.mxu1  ;;  %4800 = vmatpush3.bf16.msra.mxu1 %v5131_v61 }
 0x310   : > { %v4198_v20 = vpop.f32.mrf.mxu0 }
 0x311   : > { %4767 = vmatprep.mubr.bf16.mxu1 %v1841_v11  ;;  %v4199_v15 = vadd.f32 %v4198_v20, %v4197_v16  ;;  %v5132_v16 = vld [vmem:[%s6447_s9 + $0x10] sm:$0xff]  }
 0x312   : > { %v4200_v14 = vpop.f32.mrf.mxu0  ;;  %4801 = vmatprep.subr.bf16.mxu1 %v5132_v16 }
 0x313   : > { %4802 = vmatpush3.bf16.msra.mxu1 %v5132_v16 }
 0x314   : > { %v4201_v28 = vpop.f32.mrf.mxu0 }
 0x315   : > { %v4202_v18 = vadd.f32 %v4201_v28, %v4200_v14  ;;  %v5765_v28 = vpop.f32.mrf.mxu1 }
 0x316   : > { %v4203_v29 = vpop.f32.mrf.mxu0 }
 0x317   : > { %v1842_v30 = vpack.c.bf16 %v4202_v18, %v4199_v15 }
 0x318   : > { %v4204_v31 = vpop.f32.mrf.mxu0 }
 0x319   : > { %4768 = vmatmul.mubr.bf16.gmra.mxu1 %v1842_v30  ;;  %v4205_v34 = vadd.f32 %v4204_v31, %v4203_v29  ;;  %v5133_v29 = vld [vmem:[%s6447_s9 + $0x8] sm:$0xff]   ;;  %v5770_v31 = vpop.f32.mrf.mxu1 }
 0x31a   : > { %v4206_v32 = vpop.f32.mrf.mxu0  ;;  %4803 = vmatprep.subr.bf16.mxu1 %v5133_v29 }
 0x31b   : > { %4804 = vmatpush3.bf16.msra.mxu1 %v5133_v29 }
 0x31c   : > { %v4207_v33 = vpop.f32.mrf.mxu0 }
 0x31d   : > { %v4208_v35 = vadd.f32 %v4207_v33, %v4206_v32  ;;  %v5134_v33 = vld [vmem:[%s6447_s9] sm:$0xff]  }
 0x31e   : > { %v4209_v36 = vpop.f32.mrf.mxu0  ;;  %4805 = vmatprep.subr.bf16.mxu1 %v5134_v33 }
 0x31f   : > { %v1843_v38 = vpack.c.bf16 %v4208_v35, %v4205_v34  ;;  %4806 = vmatpush3.bf16.msra.mxu1 %v5134_v33 }
 0x320   : > { %v4210_v39 = vpop.f32.mrf.mxu0 }
 0x321   : > { %4771 = vmatprep.mubr.bf16.mxu1 %v1843_v38  ;;  %v4211_v41 = vadd.f32 %v4210_v39, %v4209_v36  ;;  %v5775_v38 = vpop.f32.mrf.mxu1 }
 0x322   : > { %v4212_v37 = vpop.f32.mrf.mxu0 }
 0x324   : > { %v4213_v40 = vpop.f32.mrf.mxu0 }
 0x325   : > { %v4214_v42 = vadd.f32 %v4213_v40, %v4212_v37 }
 0x326   : > { %v4215_v43 = vpop.f32.mrf.mxu0 }
 0x327   : > { %v1844_v44 = vpack.c.bf16 %v4214_v42, %v4211_v41  ;;  %v5777_v41 = vpop.f32.mrf.mxu1 }
 0x328   : > { %v4216_v45 = vpop.f32.mrf.mxu0 }
 0x329   : > { %4772 = vmatmul.mubr.bf16.gmra.mxu1 %v1844_v44  ;;  %v4217_v48 = vadd.f32 %v4216_v45, %v4215_v43 }
 0x32a   : > { %v4218_v46 = vpop.f32.mrf.mxu0 }
 0x32c   : > { %v4219_v47 = vpop.f32.mrf.mxu0 }
 0x32d   : > { %v4220_v49 = vadd.f32 %v4219_v47, %v4218_v46  ;;  %v5779_v46 = vpop.f32.mrf.mxu1 }
 0x32e   : > { %v4221_v50 = vpop.f32.mrf.mxu0 }
 0x32f   : > { %v1845_v51 = vpack.c.bf16 %v4220_v49, %v4217_v48 }
 0x330   : > { %v4222_v52 = vpop.f32.mrf.mxu0 }
 0x331   : > { %4775 = vmatprep.mubr.bf16.mxu1 %v1845_v51  ;;  %v4223_v55 = vadd.f32 %v4222_v52, %v4221_v50  ;;  %v5781_v50 = vpop.f32.mrf.mxu1 }
 0x332   : > { %v4224_v53 = vpop.f32.mrf.mxu0 }
 0x334   : > { %v4225_v54 = vpop.f32.mrf.mxu0 }
 0x335   : > { %v4226_v56 = vadd.f32 %v4225_v54, %v4224_v53 }
 0x336   : > { %v4227_v57 = vpop.f32.mrf.mxu0 }
 0x337   : > { %v1846_v60 = vpack.c.bf16 %v4226_v56, %v4223_v55  ;;  %v5783_v55 = vpop.f32.mrf.mxu1 }
 0x338   : > { %v4228_v0 = vpop.f32.mrf.mxu0 }
 0x339   : > { %4776 = vmatmul.mubr.bf16.gmra.mxu1 %v1846_v60  ;;  %v4229_v20 = vadd.f32 %v4228_v0, %v4227_v57  ;;  %v5785_v61 = vpop.f32.mrf.mxu1 }
 0x33a   : > { %v4230_v8 = vpop.f32.mrf.mxu0 }
 0x33c   : > { %v4231_v11 = vpop.f32.mrf.mxu0 }
 0x33d   : > { %v4232_v14 = vadd.f32 %v4231_v11, %v4230_v8 }
 0x33e   : > { %v4233_v15 = vpop.f32.mrf.mxu0 }
 0x33f   : > { %v1847_v18 = vpack.c.bf16 %v4232_v14, %v4229_v20  ;;  %v5787_v20 = vpop.f32.mrf.mxu1 }
 0x340   : > { %v4234_v30 = vpop.f32.mrf.mxu0 }
 0x341   : > { %4779 = vmatprep.mubr.bf16.mxu1 %v1847_v18  ;;  %v4235_v35 = vadd.f32 %v4234_v30, %v4233_v15  ;;  %v5789_v29 = vpop.f32.mrf.mxu1 }
 0x342   : > { %v4236_v32 = vpop.f32.mrf.mxu0 }
 0x344   : > { %v4237_v34 = vpop.f32.mrf.mxu0 }
 0x345   : > { %v4238_v36 = vadd.f32 %v4237_v34, %v4236_v32 }
 0x346   : > { %v4239_v39 = vpop.f32.mrf.mxu0 }
 0x347   : > { %v1848_v37 = vpack.c.bf16 %v4238_v36, %v4235_v35  ;;  %v5791_v35 = vpop.f32.mrf.mxu1 }
 0x348   : > { %v4240_v40 = vpop.f32.mrf.mxu0 }
 0x349   : > { %4780 = vmatmul.mubr.bf16.gmra.mxu1 %v1848_v37  ;;  %v4241_v44 = vadd.f32 %v4240_v40, %v4239_v39  ;;  %v5793_v39 = vpop.f32.mrf.mxu1 }
 0x34a   : > { %v4242_v42 = vpop.f32.mrf.mxu0 }
 0x34b   : > { %v5795_v37 = vpop.f32.mrf.mxu1 }
 0x34c   : > { %v4243_v43 = vpop.f32.mrf.mxu0 }
 0x34d   : > { %v4244_v45 = vadd.f32 %v4243_v43, %v4242_v42  ;;  %v5797_v40 = vpop.f32.mrf.mxu1 }
 0x34e   : > { %v4245_v47 = vpop.f32.mrf.mxu0 }
 0x34f   : > { %v1849_v48 = vpack.c.bf16 %v4244_v45, %v4241_v44  ;;  %v5799_v42 = vpop.f32.mrf.mxu1 }
 0x350   : > { %v4246_v49 = vpop.f32.mrf.mxu0 }
 0x351   : > { %4783 = vmatprep.mubr.bf16.mxu1 %v1849_v48  ;;  %v4247_v53 = vadd.f32 %v4246_v49, %v4245_v47  ;;  %v5801_v43 = vpop.f32.mrf.mxu1 }
 0x352   : > { %v4248_v51 = vpop.f32.mrf.mxu0 }
 0x353   : > { %v5803_v44 = vpop.f32.mrf.mxu1 }
 0x354   : > { %v4249_v52 = vpop.f32.mrf.mxu0 }
 0x355   : > { %v4250_v54 = vadd.f32 %v4249_v52, %v4248_v51  ;;  %v5805_v45 = vpop.f32.mrf.mxu1 }
 0x356   : > { %v4251_v56 = vpop.f32.mrf.mxu0 }
 0x357   : > { %v1850_v57 = vpack.c.bf16 %v4250_v54, %v4247_v53  ;;  %v5807_v47 = vpop.f32.mrf.mxu1 }
 0x358   : > { %v4252_v60 = vpop.f32.mrf.mxu0 }
 0x359   : > { %4784 = vmatmul.mubr.bf16.gmra.mxu1 %v1850_v57  ;;  %v4253_v16 = vadd.f32 %v4252_v60, %v4251_v56  ;;  %v5809_v48 = vpop.f32.mrf.mxu1 }
 0x35a   : > { %v4254_v0 = vpop.f32.mrf.mxu0 }
 0x35b   : > { %v5811_v49 = vpop.f32.mrf.mxu1 }
 0x35c   : > { %v4255_v8 = vpop.f32.mrf.mxu0 }
 0x35d   : > { %v4256_v11 = vadd.f32 %v4255_v8, %v4254_v0  ;;  %v5813_v51 = vpop.f32.mrf.mxu1 }
 0x35e   : > { %v4257_v14 = vpop.f32.mrf.mxu0 }
 0x35f   : > { %v1851_v15 = vpack.c.bf16 %v4256_v11, %v4253_v16  ;;  %v5815_v52 = vpop.f32.mrf.mxu1 }
 0x360   : > { %v4258_v18 = vpop.f32.mrf.mxu0 }
 0x361   : > { %4787 = vmatprep.mubr.bf16.mxu1 %v1851_v15  ;;  %v4259_v33 = vadd.f32 %v4258_v18, %v4257_v14  ;;  %v5817_v53 = vpop.f32.mrf.mxu1 }
 0x362   : > { %v4260_v30 = vpop.f32.mrf.mxu0 }
 0x363   : > { %v5819_v54 = vpop.f32.mrf.mxu1 }
 0x364   : > { %v4261_v32 = vpop.f32.mrf.mxu0 }
 0x365   : > { %v4262_v34 = vadd.f32 %v4261_v32, %v4260_v30  ;;  %v5821_v56 = vpop.f32.mrf.mxu1  ;;  %v5838_v32 = vld [vmem:[%s6445_s7] ss:$0 sm:$0xff] }
 0x367   : > { %v1852_v36 = vpack.c.bf16 %v4262_v34, %v4259_v33  ;;  %v5823_v57 = vpop.f32.mrf.mxu1 }
 0x369   : > { %4788 = vmatmul.mubr.bf16.gmra.mxu1 %v1852_v36  ;;  %v5825_v60 = vpop.f32.mrf.mxu1 }
 0x36b   : > { %v5827_v0 = vpop.f32.mrf.mxu1 }
 0x36d   : > { %v5829_v8 = vpop.f32.mrf.mxu1 }
 0x36f   : > { %v5831_v16 = vpop.f32.mrf.mxu1 }
 0x3b9   : > { %v4761_v11 = vpop.f32.mrf.mxu1 }
 0x3ba   : > { %v2153_v18 = vadd.f32 %v4761_v11, %v5760_v1 }
 0x3bb   : > { %v2144_v14 = vpop.f32.mrf.mxu1 }
 0x3bc   : > { %v2145_v15 = vadd.f32 %v2144_v14, %v5765_v28  ;;  %v2279_v26 = vadd.f32 %v5838_v32, %v2153_v18 }
 0x3bd   : > { %v4762_v30 = vpop.f32.mrf.mxu1 }
 0x3be   : > { %v2156_v33 = vadd.f32 %v4762_v30, %v5770_v31  ;;  %v2277_v36 = vadd.f32 %v5838_v32, %v2145_v15  ;;  %v2311_v25 = vmax.f32 %v2279_v26, 0.0 }
 0x3bf   : > { %v2147_v34 = vpop.f32.mrf.mxu1 }
 0x3c0   : > { %v2280_v27 = vadd.f32 %v5838_v32, %v2156_v33  ;;  %v2148_v13 = vadd.f32 %v2147_v34, %v5775_v38  ;;  %v2309_v11 = vmax.f32 %v2277_v36, 0.0 }
 0x3c2   : > { %v2278_v28 = vadd.f32 %v5838_v32, %v2148_v13  ;;  %v2312_v1 = vmax.f32 %v2280_v27, 0.0 }
 0x3c4   : > { %v2310_v14 = vmax.f32 %v2278_v28, 0.0  ;;  %v5848_v24 = vpack.c.bf16 %v2312_v1, %v2311_v25 }
 0x3c6   : > { %v5846_v12 = vpack.c.bf16 %v2310_v14, %v2309_v11 }
 0x3c8   : > { %4807 = vmatprep.mubr.bf16.mxu1 %v5846_v12 }
 0x3c9   : > { %v4765_v31 = vpop.f32.mrf.mxu1  ;;  %4808 = vmatmul.mubr.bf16.vlgmr.msra.gmra.mxu1 %v5848_v24 }
 0x3ca   : > { %v2169_v18 = vadd.f32 %v4765_v31, %v5777_v41 }
 0x3cb   : > { %v2160_v15 = vpop.f32.mrf.mxu1 }
 0x3cc   : > { %v2161_v38 = vadd.f32 %v2160_v15, %v5779_v46  ;;  %v2283_v34 = vadd.f32 %v5838_v32, %v2169_v18 }
 0x3cd   : > { %v4766_v30 = vpop.f32.mrf.mxu1 }
 0x3ce   : > { %v2172_v13 = vadd.f32 %v4766_v30, %v5781_v50  ;;  %v2281_v26 = vadd.f32 %v5838_v32, %v2161_v38  ;;  %v2315_v46 = vmax.f32 %v2283_v34, 0.0 }
 0x3cf   : > { %v2163_v27 = vpop.f32.mrf.mxu1 }
 0x3d0   : > { %v2284_v33 = vadd.f32 %v5838_v32, %v2172_v13  ;;  %v2164_v25 = vadd.f32 %v2163_v27, %v5783_v55  ;;  %v2313_v1 = vmax.f32 %v2281_v26, 0.0 }
 0x3d2   : > { %v2282_v36 = vadd.f32 %v5838_v32, %v2164_v25  ;;  %v2316_v28 = vmax.f32 %v2284_v33, 0.0 }
 0x3d4   : > { %v2314_v11 = vmax.f32 %v2282_v36, 0.0  ;;  %v5862_v41 = vpack.c.bf16 %v2316_v28, %v2315_v46 }
 0x3d6   : > { %v5860_v14 = vpack.c.bf16 %v2314_v11, %v2313_v1 }
 0x3d8   : > { %4811 = vmatprep.mubr.bf16.mxu1 %v5860_v14 }
 0x3d9   : > { %v4769_v50 = vpop.f32.mrf.mxu1  ;;  %4812 = vmatmul.mubr.bf16.gmra.mxu1 %v5862_v41 }
 0x3da   : > { %v2185_v15 = vadd.f32 %v4769_v50, %v5785_v61 }
 0x3db   : > { %v2176_v31 = vpop.f32.mrf.mxu1 }
 0x3dc   : > { %v2177_v55 = vadd.f32 %v2176_v31, %v5787_v20  ;;  %v2287_v33 = vadd.f32 %v5838_v32, %v2185_v15 }
 0x3dd   : > { %v4770_v38 = vpop.f32.mrf.mxu1 }
 0x3de   : > { %v2188_v18 = vadd.f32 %v4770_v38, %v5789_v29  ;;  %v2285_v13 = vadd.f32 %v5838_v32, %v2177_v55  ;;  %v2319_v20 = vmax.f32 %v2287_v33, 0.0 }
 0x3df   : > { %v2179_v30 = vpop.f32.mrf.mxu1 }
 0x3e0   : > { %v2288_v27 = vadd.f32 %v5838_v32, %v2188_v18  ;;  %v2180_v26 = vadd.f32 %v2179_v30, %v5791_v35  ;;  %v2317_v36 = vmax.f32 %v2285_v13, 0.0 }
 0x3e2   : > { %v2286_v25 = vadd.f32 %v5838_v32, %v2180_v26  ;;  %v2320_v34 = vmax.f32 %v2288_v27, 0.0 }
 0x3e4   : > { %v2318_v28 = vmax.f32 %v2286_v25, 0.0  ;;  %v5876_v61 = vpack.c.bf16 %v2320_v34, %v2319_v20 }
 0x3e6   : > { %v5874_v1 = vpack.c.bf16 %v2318_v28, %v2317_v36 }
 0x3e8   : > { %4815 = vmatprep.mubr.bf16.mxu1 %v5874_v1 }
 0x3e9   : > { %v4773_v29 = vpop.f32.mrf.mxu1  ;;  %4816 = vmatmul.mubr.bf16.gmra.mxu1 %v5876_v61 }
 0x3ea   : > { %v2201_v46 = vadd.f32 %v4773_v29, %v5793_v39 }
 0x3eb   : > { %v2192_v11 = vpop.f32.mrf.mxu1 }
 0x3ec   : > { %v2193_v35 = vadd.f32 %v2192_v11, %v5795_v37  ;;  %v2291_v30 = vadd.f32 %v5838_v32, %v2201_v46 }
 0x3ed   : > { %v4774_v50 = vpop.f32.mrf.mxu1 }
 0x3ee   : > { %v2204_v31 = vadd.f32 %v4774_v50, %v5797_v40  ;;  %v2289_v15 = vadd.f32 %v5838_v32, %v2193_v35  ;;  %v2323_v37 = vmax.f32 %v2291_v30, 0.0 }
 0x3ef   : > { %v2195_v55 = vpop.f32.mrf.mxu1 }
 0x3f0   : > { %v2292_v38 = vadd.f32 %v5838_v32, %v2204_v31  ;;  %v2196_v18 = vadd.f32 %v2195_v55, %v5799_v42  ;;  %v2321_v26 = vmax.f32 %v2289_v15, 0.0 }
 0x3f2   : > { %v2290_v13 = vadd.f32 %v5838_v32, %v2196_v18  ;;  %v2324_v27 = vmax.f32 %v2292_v38, 0.0 }
 0x3f4   : > { %v2322_v33 = vmax.f32 %v2290_v13, 0.0  ;;  %v5890_v39 = vpack.c.bf16 %v2324_v27, %v2323_v37 }
 0x3f6   : > { %v5888_v25 = vpack.c.bf16 %v2322_v33, %v2321_v26 }
 0x3f8   : > { %4819 = vmatprep.mubr.bf16.mxu1 %v5888_v25 }
 0x3f9   : > { %v4777_v40 = vpop.f32.mrf.mxu1  ;;  %4820 = vmatmul.mubr.bf16.gmra.mxu1 %v5890_v39 }
 0x3fa   : > { %v2217_v36 = vadd.f32 %v4777_v40, %v5801_v43 }
 0x3fb   : > { %v2208_v34 = vpop.f32.mrf.mxu1 }
 0x3fc   : > { %v2209_v42 = vadd.f32 %v2208_v34, %v5803_v44  ;;  %v2295_v50 = vadd.f32 %v5838_v32, %v2217_v36 }
 0x3fd   : > { %v4778_v28 = vpop.f32.mrf.mxu1 }
 0x3fe   : > { %v2220_v20 = vadd.f32 %v4778_v28, %v5805_v45  ;;  %v2293_v11 = vadd.f32 %v5838_v32, %v2209_v42  ;;  %v2327_v44 = vmax.f32 %v2295_v50, 0.0 }
 0x3ff   : > { %v2211_v29 = vpop.f32.mrf.mxu1 }
 0x400   : > { %v2296_v35 = vadd.f32 %v5838_v32, %v2220_v20  ;;  %v2212_v46 = vadd.f32 %v2211_v29, %v5807_v47  ;;  %v2325_v15 = vmax.f32 %v2293_v11, 0.0 }
 0x402   : > { %v2294_v31 = vadd.f32 %v5838_v32, %v2212_v46  ;;  %v2328_v55 = vmax.f32 %v2296_v35, 0.0 }
 0x404   : > { %v2326_v38 = vmax.f32 %v2294_v31, 0.0  ;;  %v5904_v43 = vpack.c.bf16 %v2328_v55, %v2327_v44 }
 0x406   : > { %v5902_v18 = vpack.c.bf16 %v2326_v38, %v2325_v15 }
 0x408   : > { %4823 = vmatprep.mubr.bf16.mxu1 %v5902_v18 }
 0x409   : > { %v4781_v45 = vpop.f32.mrf.mxu1  ;;  %4824 = vmatmul.mubr.bf16.gmra.mxu1 %v5904_v43 }
 0x40a   : > { %v2233_v13 = vadd.f32 %v4781_v45, %v5809_v48 }
 0x40b   : > { %v2224_v30 = vpop.f32.mrf.mxu1 }
 0x40c   : > { %v2225_v47 = vadd.f32 %v2224_v30, %v5811_v49  ;;  %v2299_v42 = vadd.f32 %v5838_v32, %v2233_v13 }
 0x40d   : > { %v4782_v27 = vpop.f32.mrf.mxu1 }
 0x40e   : > { %v2236_v26 = vadd.f32 %v4782_v27, %v5813_v51  ;;  %v2297_v37 = vadd.f32 %v5838_v32, %v2225_v47  ;;  %v2331_v49 = vmax.f32 %v2299_v42, 0.0 }
 0x40f   : > { %v2227_v33 = vpop.f32.mrf.mxu1 }
 0x410   : > { %v2300_v40 = vadd.f32 %v5838_v32, %v2236_v26  ;;  %v2228_v34 = vadd.f32 %v2227_v33, %v5815_v52  ;;  %v2329_v20 = vmax.f32 %v2297_v37, 0.0 }
 0x412   : > { %v2298_v36 = vadd.f32 %v5838_v32, %v2228_v34  ;;  %v2332_v28 = vmax.f32 %v2300_v40, 0.0 }
 0x414   : > { %v2330_v29 = vmax.f32 %v2298_v36, 0.0  ;;  %v2352_v48 = vpack.c.bf16 %v2332_v28, %v2331_v49 }
 0x416   : > { %v2351_v11 = vpack.c.bf16 %v2330_v29, %v2329_v20 }
 0x418   : > { %4827 = vmatprep.mubr.bf16.mxu1 %v2351_v11 }
 0x419   : > { %v4785_v35 = vpop.f32.mrf.mxu1  ;;  %4828 = vmatmul.mubr.bf16.gmra.mxu1 %v2352_v48 }
 0x41a   : > { %v2249_v50 = vadd.f32 %v4785_v35, %v5817_v53 }
 0x41b   : > { %v2240_v51 = vpop.f32.mrf.mxu1 }
 0x41c   : > { %v2241_v46 = vadd.f32 %v2240_v51, %v5819_v54  ;;  %v2303_v45 = vadd.f32 %v5838_v32, %v2249_v50 }
 0x41d   : > { %v4786_v31 = vpop.f32.mrf.mxu1 }
 0x41e   : > { %v2252_v52 = vadd.f32 %v4786_v31, %v5821_v56  ;;  %v2301_v15 = vadd.f32 %v5838_v32, %v2241_v46  ;;  %v2335_v54 = vmax.f32 %v2303_v45, 0.0 }
 0x41f   : > { %v2243_v55 = vpop.f32.mrf.mxu1 }
 0x420   : > { %v2304_v38 = vadd.f32 %v5838_v32, %v2252_v52  ;;  %v2244_v44 = vadd.f32 %v2243_v55, %v5823_v57  ;;  %v2333_v13 = vmax.f32 %v2301_v15, 0.0 }
 0x422   : > { %v2302_v30 = vadd.f32 %v5838_v32, %v2244_v44  ;;  %v2336_v47 = vmax.f32 %v2304_v38, 0.0 }
 0x424   : > { %v2334_v27 = vmax.f32 %v2302_v30, 0.0  ;;  %v2354_v53 = vpack.c.bf16 %v2336_v47, %v2335_v54  ;;  %v5144_v30 = vld [vmem:[%s6450_s12 + $0x30] sm:$0xff]  }
 0x426   : > { %v2353_v26 = vpack.c.bf16 %v2334_v27, %v2333_v13  ;;  %v5145_v27 = vld [vmem:[%s6450_s12 + $0x28] sm:$0xff]  }
 0x428   : > { %4831 = vmatprep.mubr.bf16.mxu1 %v2353_v26 }
 0x429   : > { %v4789_v33 = vpop.f32.mrf.mxu1  ;;  %4832 = vmatmul.mubr.bf16.gmra.mxu1 %v2354_v53 }
 0x42a   : > { %v2265_v56 = vadd.f32 %v4789_v33, %v5825_v60 }
 0x42b   : > { %v2256_v37 = vpop.f32.mrf.mxu1 }
 0x42c   : > { %v2257_v40 = vadd.f32 %v2256_v37, %v5827_v0  ;;  %v2307_v57 = vadd.f32 %v5838_v32, %v2265_v56  ;;  %v5146_v37 = vld [vmem:[%s6450_s12 + $0x20] sm:$0xff]  }
 0x42d   : > { %v4790_v34 = vpop.f32.mrf.mxu1 }
 0x42e   : > { %v2268_v42 = vadd.f32 %v4790_v34, %v5829_v8  ;;  %v2305_v28 = vadd.f32 %v5838_v32, %v2257_v40  ;;  %v2339_v49 = vmax.f32 %v2307_v57, 0.0  ;;  %v5942_v8 = vld [vmem:[#allocation2] ss:$8 sps:$4 sm:$0xff]  }
 0x42f   : > { %v2259_v36 = vpop.f32.mrf.mxu1 }
 0x430   : > { %v2308_v20 = vadd.f32 %v5838_v32, %v2268_v42  ;;  %v2260_v29 = vadd.f32 %v2259_v36, %v5831_v16  ;;  %v2337_v60 = vmax.f32 %v2305_v28, 0.0  ;;  %v5945_v16 = vld [vmem:[#allocation2 + $0x14] ss:$8 sps:$4 sm:$0xff]  }
 0x432   : > { %v2340_v35 = vmax.f32 %v2308_v20, 0.0  ;;  %v2306_v51 = vadd.f32 %v5838_v32, %v2260_v29  ;;  %v5948_v32 = vld [vmem:[#allocation2 + $0x10] ss:$8 sps:$4 sm:$0xff]  }
 0x434   : > { %v2338_v46 = vmax.f32 %v2306_v51, 0.0  ;;  %v2356_v50 = vpack.c.bf16 %v2340_v35, %v2339_v49 }
 0x436   : > { %4311 = vmatprep.subr.bf16.mxu0 %v2356_v50  ;;  %v2355_v0 = vpack.c.bf16 %v2338_v46, %v2337_v60 }
 0x437   : > { %4312 = vmatpush3.bf16.msra.mxu0 %v5890_v39 }
 0x438   : > { %4313 = vmatprep.subr.bf16.mxu0 %v2355_v0  ;;  %4835 = vmatprep.mubr.bf16.mxu1 %v2355_v0 }
 0x439   : > { %4836 = vmatmul.mubr.bf16.gmra.mxu1 %v2356_v50 }
 0x43b   : > { %4314 = vmatpush3.bf16.msra.mxu0 %v5888_v25  ;;  %v5136_v25 = vld [vmem:[%s6446_s8 + $0x30] sm:$0xff]  }
 0x43c   : > { %4315 = vmatprep.subr.bf16.mxu0 %v2354_v53 }
 0x43f   : > { %4316 = vmatpush3.bf16.msra.mxu0 %v5876_v61  ;;  %v5135_v61 = vld [vmem:[%s6446_s8 + $0x38] sm:$0xff]  }
 0x440   : > { %4317 = vmatprep.subr.bf16.mxu0 %v2353_v26  ;;  %4839 = vmatprep.subr.bf16.mxu1 %v5135_v61 }
 0x441   : > { %4840 = vmatpush3.bf16.msra.mxu1 %v5135_v61 }
 0x442   : > { %4841 = vmatprep.subr.bf16.mxu1 %v5136_v25 }
 0x443   : > { %4318 = vmatpush3.bf16.msra.mxu0 %v5874_v1  ;;  %v5963_v1 = vld [vmem:[#allocation2 + $0x44] ss:$8 sps:$4 sm:$0xff]  }
 0x444   : > { %4319 = vmatprep.subr.bf16.mxu0 %v2352_v48 }
 0x445   : > { %4842 = vmatpush3.bf16.msra.mxu1 %v5136_v25 }
 0x447   : > { %4320 = vmatpush3.bf16.msra.mxu0 %v5862_v41  ;;  %v5960_v41 = vld [vmem:[#allocation2 + $0x30] ss:$8 sps:$4 sm:$0xff]  }
 0x448   : > { %4321 = vmatprep.subr.bf16.mxu0 %v2351_v11 }
 0x44b   : > { %4322 = vmatpush3.bf16.msra.mxu0 %v5860_v14  ;;  %v5951_v14 = vld [vmem:[#allocation2 + $0x24] ss:$8 sps:$4 sm:$0xff]  }
 0x44c   : > { %4323 = vmatprep.subr.bf16.mxu0 %v5904_v43 }
 0x44f   : > { %4324 = vmatpush3.bf16.msra.mxu0 %v5848_v24  ;;  %v5954_v24 = vld [vmem:[#allocation2 + $0x20] ss:$8 sps:$4 sm:$0xff]  }
 0x450   : > { %4325 = vmatprep.subr.bf16.mxu0 %v5902_v18 }
 0x453   : > { %4326 = vmatpush3.bf16.msra.mxu0 %v5846_v12  ;;  %v5957_v12 = vld [vmem:[#allocation2 + $0x34] ss:$8 sps:$4 sm:$0xff]  }
 0x456   : > { %2423 = vmatmul.mubr.bf16.vlgmr.msra.gmra.mxu0 %v5942_v8 }
 0x457   : > { %2430 = vmatprep.mubr.bf16.mxu0 %v5945_v16 }
 0x45e   : > { %2431 = vmatmul.mubr.bf16.gmra.mxu0 %v5948_v32 }
 0x45f   : > { %2438 = vmatprep.mubr.bf16.mxu0 %v5951_v14 }
 0x466   : > { %2439 = vmatmul.mubr.bf16.gmra.mxu0 %v5954_v24 }
 0x467   : > { %2446 = vmatprep.mubr.bf16.mxu0 %v5957_v12 }
 0x46e   : > { %2447 = vmatmul.mubr.bf16.gmra.mxu0 %v5960_v41 }
 0x46f   : > { %2454 = vmatprep.mubr.bf16.mxu0 %v5963_v1 }
 0x476   : > { %2455 = vmatmul.mubr.bf16.gmra.mxu0 %v5638_v58  ;;  %v5137_v58 = vld [vmem:[%s6446_s8 + $0x28] sm:$0xff]  }
 0x477   : > { %2462 = vmatprep.mubr.bf16.mxu0 %v5640_v59  ;;  %4843 = vmatprep.subr.bf16.mxu1 %v5137_v58  ;;  %v5138_v59 = vld [vmem:[%s6446_s8 + $0x20] sm:$0xff]  }
 0x478   : > { %4844 = vmatpush3.bf16.msra.mxu1 %v5137_v58 }
 0x479   : > { %4845 = vmatprep.subr.bf16.mxu1 %v5138_v59 }
 0x47c   : > { %4846 = vmatpush3.bf16.msra.mxu1 %v5138_v59 }
 0x47e   : > { %2463 = vmatmul.mubr.bf16.gmra.mxu0 %v5650_v62  ;;  %v5139_v62 = vld [vmem:[%s6446_s8 + $0x18] sm:$0xff]  }
 0x47f   : > { %2470 = vmatprep.mubr.bf16.mxu0 %v5652_v63  ;;  %4847 = vmatprep.subr.bf16.mxu1 %v5139_v62  ;;  %v5140_v63 = vld [vmem:[%s6446_s8 + $0x10] sm:$0xff]  }
 0x480   : > { %4848 = vmatpush3.bf16.msra.mxu1 %v5139_v62 }
 0x481   : > { %4849 = vmatprep.subr.bf16.mxu1 %v5140_v63 }
 0x484   : > { %4850 = vmatpush3.bf16.msra.mxu1 %v5140_v63 }
 0x486   : > { %2471 = vmatmul.mubr.bf16.gmra.mxu0 %v5662_v2  ;;  %v5141_v2 = vld [vmem:[%s6446_s8 + $0x8] sm:$0xff]  }
 0x487   : > { %2478 = vmatprep.mubr.bf16.mxu0 %v5665_v3  ;;  %4851 = vmatprep.subr.bf16.mxu1 %v5141_v2  ;;  %v5142_v3 = vld [vmem:[%s6446_s8] sm:$0xff]  }
 0x488   : > { %4852 = vmatpush3.bf16.msra.mxu1 %v5141_v2 }
 0x489   : > { %4853 = vmatprep.subr.bf16.mxu1 %v5142_v3 }
 0x48c   : > { %4854 = vmatpush3.bf16.msra.mxu1 %v5142_v3 }
 0x48e   : > { %2479 = vmatmul.mubr.bf16.gmra.mxu0 %v5670_v4  ;;  %v6465_v4 = vld [vmem:[#allocation4_spill] sm:$0xff] }
 0x48f   : > { %2486 = vmatprep.mubr.bf16.mxu0 %v5673_v5  ;;  %v6466_v5 = vld [vmem:[#allocation5_spill] sm:$0xff] }
 0x496   : > { %2487 = vmatmul.mubr.bf16.gmra.mxu0 %v5678_v6  ;;  %v6467_v6 = vld [vmem:[#allocation6_spill] sm:$0xff] }
 0x497   : > { %2494 = vmatprep.mubr.bf16.mxu0 %v5681_v7  ;;  %v6468_v7 = vld [vmem:[#allocation7_spill] sm:$0xff] }
 0x49e   : > { %2495 = vmatmul.mubr.bf16.gmra.mxu0 %v5689_v9  ;;  %v6469_v9 = vld [vmem:[#allocation8_spill] sm:$0xff] }
 0x49f   : > { %2502 = vmatprep.mubr.bf16.mxu0 %v5692_v10  ;;  %v6470_v10 = vld [vmem:[#allocation9_spill] sm:$0xff] }
 0x4a6   : > { %2503 = vmatmul.mubr.bf16.gmra.mxu0 %v5703_v17  ;;  %v5167_v17 = vld [vmem:[#allocation2 + $0x4] ss:$8 sps:$4 sm:$0xff]  }
 0x4a7   : > { %2510 = vmatprep.mubr.bf16.mxu0 %v5706_v19 }
 0x4ae   : > { %2511 = vmatmul.mubr.bf16.gmra.mxu0 %v5714_v21 }
 0x4af   : > { %2518 = vmatprep.mubr.bf16.mxu0 %v5717_v22  ;;  %v5143_v22 = vld [vmem:[%s6450_s12 + $0x38] sm:$0xff]  }
 0x4b0   : > { %4887 = vmatprep.subr.bf16.mxu1 %v5143_v22 }
 0x4b6   : > { %2519 = vmatmul.mubr.bf16.gmra.mxu0 %v5722_v23 }
 0x4b7   : > { %2526 = vmatprep.mubr.bf16.mxu0 %v6465_v4 }
 0x4be   : > { %2527 = vmatmul.mubr.bf16.gmra.mxu0 %v6466_v5 }
 0x4bf   : > { %2534 = vmatprep.mubr.bf16.mxu0 %v6467_v6 }
 0x4c6   : > { %2535 = vmatmul.mubr.bf16.gmra.mxu0 %v6468_v7 }
 0x4c7   : > { %2542 = vmatprep.mubr.bf16.mxu0 %v6469_v9 }
 0x4ce   : > { %2543 = vmatmul.mubr.bf16.gmra.mxu0 %v6470_v10 }
 0x4cf   : > { %3136 = vmatprep.mubr.bf16.mxu0 %v5167_v17 }
 0x516   : > { %v4327_v19 = vpop.f32.mrf.mxu0 }
 0x518   : > { %v4328_v21 = vpop.f32.mrf.mxu0 }
 0x519   : > { %v4329_v18 = vadd.f32 %v4328_v21, %v4327_v19 }
 0x51a   : > { %v4330_v23 = vpop.f32.mrf.mxu0 }
 0x51c   : > { %v4331_v39 = vpop.f32.mrf.mxu0 }
 0x51d   : > { %v4332_v43 = vadd.f32 %v4331_v39, %v4330_v23 }
 0x51e   : > { %v4333_v11 = vpop.f32.mrf.mxu0 }
 0x51f   : > { %v2551_v48 = vpack.c.bf16 %v4332_v43, %v4329_v18 }
 0x520   : > { %v4334_v31 = vpop.f32.mrf.mxu0 }
 0x521   : > { %4855 = vmatprep.mubr.bf16.mxu1 %v2551_v48  ;;  %v4335_v15 = vadd.f32 %v4334_v31, %v4333_v11 }
 0x522   : > { %v4336_v52 = vpop.f32.mrf.mxu0 }
 0x524   : > { %v4337_v55 = vpop.f32.mrf.mxu0 }
 0x525   : > { %v4338_v38 = vadd.f32 %v4337_v55, %v4336_v52 }
 0x526   : > { %v4339_v44 = vpop.f32.mrf.mxu0 }
 0x527   : > { %v2552_v45 = vpack.c.bf16 %v4338_v38, %v4335_v15 }
 0x528   : > { %v4340_v47 = vpop.f32.mrf.mxu0 }
 0x529   : > { %4856 = vmatmul.mubr.bf16.vlgmr.msra.gmra.mxu1 %v2552_v45  ;;  %v4341_v26 = vadd.f32 %v4340_v47, %v4339_v44 }
 0x52a   : > { %v4342_v13 = vpop.f32.mrf.mxu0  ;;  %4888 = vmatpush3.bf16.msra.mxu1 %v5143_v22 }
 0x52b   : > { %4889 = vmatprep.subr.bf16.mxu1 %v5144_v30 }
 0x52c   : > { %v4343_v54 = vpop.f32.mrf.mxu0 }
 0x52d   : > { %v4344_v53 = vadd.f32 %v4343_v54, %v4342_v13 }
 0x52e   : > { %v4345_v33 = vpop.f32.mrf.mxu0  ;;  %4890 = vmatpush3.bf16.msra.mxu1 %v5144_v30 }
 0x52f   : > { %v2553_v56 = vpack.c.bf16 %v4344_v53, %v4341_v26  ;;  %4891 = vmatprep.subr.bf16.mxu1 %v5145_v27  ;;  %v5148_v53 = vld [vmem:[%s6450_s12 + $0x10] sm:$0xff]  }
 0x530   : > { %v4346_v40 = vpop.f32.mrf.mxu0 }
 0x531   : > { %4859 = vmatprep.mubr.bf16.mxu1 %v2553_v56  ;;  %v4347_v42 = vadd.f32 %v4346_v40, %v4345_v33 }
 0x532   : > { %v4348_v34 = vpop.f32.mrf.mxu0  ;;  %4892 = vmatpush3.bf16.msra.mxu1 %v5145_v27  ;;  %v5147_v27 = vld [vmem:[%s6450_s12 + $0x18] sm:$0xff]  }
 0x533   : > { %4893 = vmatprep.subr.bf16.mxu1 %v5146_v37 }
 0x534   : > { %v4349_v57 = vpop.f32.mrf.mxu0 }
 0x535   : > { %v4350_v36 = vadd.f32 %v4349_v57, %v4348_v34  ;;  %v5149_v57 = vld [vmem:[%s6450_s12 + $0x8] sm:$0xff]  }
 0x536   : > { %v4351_v28 = vpop.f32.mrf.mxu0  ;;  %4894 = vmatpush3.bf16.msra.mxu1 %v5146_v37 }
 0x537   : > { %v2554_v20 = vpack.c.bf16 %v4350_v36, %v4347_v42  ;;  %4895 = vmatprep.subr.bf16.mxu1 %v5147_v27 }
 0x538   : > { %v4352_v29 = vpop.f32.mrf.mxu0 }
 0x539   : > { %4860 = vmatmul.mubr.bf16.gmra.mxu1 %v2554_v20  ;;  %v4353_v51 = vadd.f32 %v4352_v29, %v4351_v28  ;;  %v5150_v28 = vld [vmem:[%s6450_s12] sm:$0xff]  }
 0x53a   : > { %v4354_v49 = vpop.f32.mrf.mxu0  ;;  %4896 = vmatpush3.bf16.msra.mxu1 %v5147_v27 }
 0x53b   : > { %4897 = vmatprep.subr.bf16.mxu1 %v5148_v53 }
 0x53c   : > { %v4355_v35 = vpop.f32.mrf.mxu0 }
 0x53d   : > { %v4356_v60 = vadd.f32 %v4355_v35, %v4354_v49 }
 0x53e   : > { %v4357_v46 = vpop.f32.mrf.mxu0  ;;  %4898 = vmatpush3.bf16.msra.mxu1 %v5148_v53 }
 0x53f   : > { %v2555_v50 = vpack.c.bf16 %v4356_v60, %v4353_v51  ;;  %4899 = vmatprep.subr.bf16.mxu1 %v5149_v57 }
 0x540   : > { %v4358_v0 = vpop.f32.mrf.mxu0 }
 0x541   : > { %4863 = vmatprep.mubr.bf16.mxu1 %v2555_v50  ;;  %v4359_v58 = vadd.f32 %v4358_v0, %v4357_v46  ;;  %v6037_v46 = vpop.f32.mrf.mxu1 }
 0x542   : > { %v4360_v61 = vpop.f32.mrf.mxu0  ;;  %4900 = vmatpush3.bf16.msra.mxu1 %v5149_v57 }
 0x543   : > { %4901 = vmatprep.subr.bf16.mxu1 %v5150_v28 }
 0x544   : > { %v4361_v25 = vpop.f32.mrf.mxu0 }
 0x545   : > { %v4362_v59 = vadd.f32 %v4361_v25, %v4360_v61  ;;  %v2649_v61 = vpop.f32.mrf.mxu1 }
 0x546   : > { %v4363_v62 = vpop.f32.mrf.mxu0  ;;  %4902 = vmatpush3.bf16.msra.mxu1 %v5150_v28 }
 0x547   : > { %v2556_v63 = vpack.c.bf16 %v4362_v59, %v4359_v58 }
 0x548   : > { %v4364_v2 = vpop.f32.mrf.mxu0 }
 0x549   : > { %4864 = vmatmul.mubr.bf16.gmra.mxu1 %v2556_v63  ;;  %v4365_v5 = vadd.f32 %v4364_v2, %v4363_v62  ;;  %v4810_v2 = vpop.f32.mrf.mxu1 }
 0x54a   : > { %v4366_v3 = vpop.f32.mrf.mxu0 }
 0x54c   : > { %v4367_v4 = vpop.f32.mrf.mxu0 }
 0x54d   : > { %v4368_v6 = vadd.f32 %v4367_v4, %v4366_v3 }
 0x54e   : > { %v4369_v7 = vpop.f32.mrf.mxu0 }
 0x54f   : > { %v2557_v9 = vpack.c.bf16 %v4368_v6, %v4365_v5  ;;  %v2652_v5 = vpop.f32.mrf.mxu1 }
 0x550   : > { %v4370_v10 = vpop.f32.mrf.mxu0 }
 0x551   : > { %4867 = vmatprep.mubr.bf16.mxu1 %v2557_v9  ;;  %v4371_v21 = vadd.f32 %v4370_v10, %v4369_v7  ;;  %v6039_v10 = vpop.f32.mrf.mxu1 }
 0x552   : > { %v4372_v17 = vpop.f32.mrf.mxu0 }
 0x554   : > { %v4373_v19 = vpop.f32.mrf.mxu0 }
 0x555   : > { %v4374_v22 = vadd.f32 %v4373_v19, %v4372_v17 }
 0x556   : > { %v4375_v23 = vpop.f32.mrf.mxu0 }
 0x557   : > { %v2558_v39 = vpack.c.bf16 %v4374_v22, %v4371_v21  ;;  %v6041_v22 = vpop.f32.mrf.mxu1 }
 0x558   : > { %v4376_v18 = vpop.f32.mrf.mxu0 }
 0x559   : > { %4868 = vmatmul.mubr.bf16.gmra.mxu1 %v2558_v39  ;;  %v4377_v48 = vadd.f32 %v4376_v18, %v4375_v23 }
 0x55a   : > { %v4378_v43 = vpop.f32.mrf.mxu0 }
 0x55c   : > { %v4379_v11 = vpop.f32.mrf.mxu0 }
 0x55d   : > { %v4380_v31 = vadd.f32 %v4379_v11, %v4378_v43  ;;  %v4814_v11 = vpop.f32.mrf.mxu1 }
 0x55e   : > { %v4381_v52 = vpop.f32.mrf.mxu0 }
 0x55f   : > { %v2559_v55 = vpack.c.bf16 %v4380_v31, %v4377_v48 }
 0x560   : > { %v4382_v15 = vpop.f32.mrf.mxu0 }
 0x561   : > { %4871 = vmatprep.mubr.bf16.mxu1 %v2559_v55  ;;  %v4383_v45 = vadd.f32 %v4382_v15, %v4381_v52  ;;  %v2668_v55 = vpop.f32.mrf.mxu1 }
 0x562   : > { %v4384_v38 = vpop.f32.mrf.mxu0 }
 0x564   : > { %v4385_v44 = vpop.f32.mrf.mxu0 }
 0x565   : > { %v4386_v30 = vadd.f32 %v4385_v44, %v4384_v38  ;;  %v6043_v38 = vpop.f32.mrf.mxu1 }
 0x566   : > { %v4387_v47 = vpop.f32.mrf.mxu0 }
 0x567   : > { %v2560_v13 = vpack.c.bf16 %v4386_v30, %v4383_v45 }
 0x568   : > { %v4388_v54 = vpop.f32.mrf.mxu0 }
 0x569   : > { %4872 = vmatmul.mubr.bf16.gmra.mxu1 %v2560_v13  ;;  %v4389_v56 = vadd.f32 %v4388_v54, %v4387_v47  ;;  %v6045_v47 = vpop.f32.mrf.mxu1 }
 0x56a   : > { %v4390_v26 = vpop.f32.mrf.mxu0 }
 0x56b   : > { %v6047_v13 = vpop.f32.mrf.mxu1 }
 0x56c   : > { %v4391_v33 = vpop.f32.mrf.mxu0 }
 0x56d   : > { %v4392_v37 = vadd.f32 %v4391_v33, %v4390_v26  ;;  %v6049_v27 = vpop.f32.mrf.mxu1 }
 0x56e   : > { %v4393_v40 = vpop.f32.mrf.mxu0 }
 0x56f   : > { %v2561_v34 = vpack.c.bf16 %v4392_v37, %v4389_v56  ;;  %v6051_v54 = vpop.f32.mrf.mxu1 }
 0x570   : > { %v4394_v42 = vpop.f32.mrf.mxu0 }
 0x571   : > { %4875 = vmatprep.mubr.bf16.mxu1 %v2561_v34  ;;  %v4395_v29 = vadd.f32 %v4394_v42, %v4393_v40  ;;  %v6053_v26 = vpop.f32.mrf.mxu1 }
 0x572   : > { %v4396_v36 = vpop.f32.mrf.mxu0 }
 0x573   : > { %v6055_v53 = vpop.f32.mrf.mxu1 }
 0x574   : > { %v4397_v20 = vpop.f32.mrf.mxu0 }
 0x575   : > { %v4398_v49 = vadd.f32 %v4397_v20, %v4396_v36  ;;  %v6057_v33 = vpop.f32.mrf.mxu1 }
 0x576   : > { %v4399_v35 = vpop.f32.mrf.mxu0 }
 0x577   : > { %v2562_v51 = vpack.c.bf16 %v4398_v49, %v4395_v29  ;;  %v6059_v56 = vpop.f32.mrf.mxu1 }
 0x578   : > { %v4400_v60 = vpop.f32.mrf.mxu0 }
 0x579   : > { %4876 = vmatmul.mubr.bf16.gmra.mxu1 %v2562_v51  ;;  %v4401_v25 = vadd.f32 %v4400_v60, %v4399_v35  ;;  %v6061_v37 = vpop.f32.mrf.mxu1 }
 0x57a   : > { %v4402_v50 = vpop.f32.mrf.mxu0 }
 0x57b   : > { %v6063_v40 = vpop.f32.mrf.mxu1 }
 0x57c   : > { %v4403_v0 = vpop.f32.mrf.mxu0 }
 0x57d   : > { %v4404_v58 = vadd.f32 %v4403_v0, %v4402_v50  ;;  %v6065_v34 = vpop.f32.mrf.mxu1 }
 0x57e   : > { %v4405_v59 = vpop.f32.mrf.mxu0 }
 0x57f   : > { %v2563_v62 = vpack.c.bf16 %v4404_v58, %v4401_v25  ;;  %v6067_v57 = vpop.f32.mrf.mxu1 }
 0x580   : > { %v4406_v63 = vpop.f32.mrf.mxu0 }
 0x581   : > { %4879 = vmatprep.mubr.bf16.mxu1 %v2563_v62  ;;  %v4407_v6 = vadd.f32 %v4406_v63, %v4405_v59  ;;  %v6069_v42 = vpop.f32.mrf.mxu1 }
 0x582   : > { %v4408_v3 = vpop.f32.mrf.mxu0 }
 0x583   : > { %v6071_v36 = vpop.f32.mrf.mxu1 }
 0x584   : > { %v4409_v4 = vpop.f32.mrf.mxu0 }
 0x585   : > { %v4410_v7 = vadd.f32 %v4409_v4, %v4408_v3  ;;  %v6073_v28 = vpop.f32.mrf.mxu1  ;;  %v6095_v3 = vld [vmem:[%s6448_s10] ss:$0 sm:$0xff] }
 0x586   : > { %v4411_v9 = vpop.f32.mrf.mxu0 }
 0x587   : > { %v2564_v17 = vpack.c.bf16 %v4410_v7, %v4407_v6  ;;  %v6075_v20 = vpop.f32.mrf.mxu1 }
 0x588   : > { %v4412_v19 = vpop.f32.mrf.mxu0 }
 0x589   : > { %4880 = vmatmul.mubr.bf16.gmra.mxu1 %v2564_v17  ;;  %v4413_v39 = vadd.f32 %v4412_v19, %v4411_v9  ;;  %v6077_v29 = vpop.f32.mrf.mxu1 }
 0x58a   : > { %v4414_v21 = vpop.f32.mrf.mxu0 }
 0x58b   : > { %v6079_v49 = vpop.f32.mrf.mxu1 }
 0x58c   : > { %v4415_v23 = vpop.f32.mrf.mxu0 }
 0x58d   : > { %v4416_v18 = vadd.f32 %v4415_v23, %v4414_v21  ;;  %v6081_v35 = vpop.f32.mrf.mxu1 }
 0x58e   : > { %v4417_v43 = vpop.f32.mrf.mxu0 }
 0x58f   : > { %v2565_v48 = vpack.c.bf16 %v4416_v18, %v4413_v39  ;;  %v6083_v51 = vpop.f32.mrf.mxu1 }
 0x590   : > { %v4418_v31 = vpop.f32.mrf.mxu0 }
 0x591   : > { %4883 = vmatprep.mubr.bf16.mxu1 %v2565_v48  ;;  %v4419_v44 = vadd.f32 %v4418_v31, %v4417_v43  ;;  %v6085_v60 = vpop.f32.mrf.mxu1 }
 0x592   : > { %v4420_v52 = vpop.f32.mrf.mxu0 }
 0x593   : > { %v6087_v50 = vpop.f32.mrf.mxu1 }
 0x594   : > { %v4421_v15 = vpop.f32.mrf.mxu0 }
 0x595   : > { %v4422_v45 = vadd.f32 %v4421_v15, %v4420_v52  ;;  %v6089_v0 = vpop.f32.mrf.mxu1 }
 0x597   : > { %v2566_v30 = vpack.c.bf16 %v4422_v45, %v4419_v44 }
 0x599   : > { %4884 = vmatmul.mubr.bf16.gmra.mxu1 %v2566_v30 }
 0x5e9   : > { %v4857_v25 = vpop.f32.mrf.mxu1 }
 0x5ea   : > { %v2867_v62 = vadd.f32 %v4857_v25, %v6037_v46 }
 0x5eb   : > { %v2858_v58 = vpop.f32.mrf.mxu1 }
 0x5ec   : > { %v2859_v59 = vadd.f32 %v2858_v58, %v2649_v61  ;;  %v2993_v19 = vadd.f32 %v6095_v3, %v2867_v62 }
 0x5ed   : > { %v4858_v63 = vpop.f32.mrf.mxu1 }
 0x5ee   : > { %v2870_v4 = vadd.f32 %v4858_v63, %v4810_v2  ;;  %v2991_v7 = vadd.f32 %v6095_v3, %v2859_v59  ;;  %v3025_v39 = vmax.f32 %v2993_v19, 0.0 }
 0x5ef   : > { %v2861_v6 = vpop.f32.mrf.mxu1 }
 0x5f0   : > { %v2994_v9 = vadd.f32 %v6095_v3, %v2870_v4  ;;  %v2862_v17 = vadd.f32 %v2861_v6, %v2652_v5  ;;  %v3023_v23 = vmax.f32 %v2991_v7, 0.0 }
 0x5f2   : > { %v2992_v21 = vadd.f32 %v6095_v3, %v2862_v17  ;;  %v3026_v61 = vmax.f32 %v2994_v9, 0.0 }
 0x5f4   : > { %v3024_v46 = vmax.f32 %v2992_v21, 0.0  ;;  %v6103_v43 = vpack.c.bf16 %v3026_v61, %v3025_v39 }
 0x5f6   : > { %v6101_v18 = vpack.c.bf16 %v3024_v46, %v3023_v23 }
 0x5f8   : > { %4903 = vmatprep.mubr.bf16.mxu1 %v6101_v18 }
 0x5f9   : > { %v4861_v2 = vpop.f32.mrf.mxu1  ;;  %4904 = vmatmul.mubr.bf16.vlgmr.msra.gmra.mxu1 %v6103_v43 }
 0x5fa   : > { %v2883_v31 = vadd.f32 %v4861_v2, %v6039_v10 }
 0x5fb   : > { %v2874_v48 = vpop.f32.mrf.mxu1 }
 0x5fc   : > { %v2875_v5 = vadd.f32 %v2874_v48, %v6041_v22  ;;  %v2997_v58 = vadd.f32 %v6095_v3, %v2883_v31 }
 0x5fd   : > { %v4862_v52 = vpop.f32.mrf.mxu1 }
 0x5fe   : > { %v2886_v15 = vadd.f32 %v4862_v52, %v4814_v11  ;;  %v2995_v45 = vadd.f32 %v6095_v3, %v2875_v5  ;;  %v3029_v6 = vmax.f32 %v2997_v58, 0.0 }
 0x5ff   : > { %v2877_v44 = vpop.f32.mrf.mxu1 }
 0x600   : > { %v2998_v30 = vadd.f32 %v6095_v3, %v2886_v15  ;;  %v2878_v25 = vadd.f32 %v2877_v44, %v2668_v55  ;;  %v3027_v63 = vmax.f32 %v2995_v45, 0.0 }
 0x602   : > { %v2996_v59 = vadd.f32 %v6095_v3, %v2878_v25  ;;  %v3030_v62 = vmax.f32 %v2998_v30, 0.0 }
 0x604   : > { %v3028_v4 = vmax.f32 %v2996_v59, 0.0  ;;  %v6115_v22 = vpack.c.bf16 %v3030_v62, %v3029_v6 }
 0x606   : > { %v6113_v7 = vpack.c.bf16 %v3028_v4, %v3027_v63 }
 0x608   : > { %4907 = vmatprep.mubr.bf16.mxu1 %v6113_v7 }
 0x609   : > { %v4865_v10 = vpop.f32.mrf.mxu1  ;;  %4908 = vmatmul.mubr.bf16.gmra.mxu1 %v6115_v22 }
 0x60a   : > { %v2899_v9 = vadd.f32 %v4865_v10, %v6043_v38 }
 0x60b   : > { %v2890_v11 = vpop.f32.mrf.mxu1 }
 0x60c   : > { %v2891_v55 = vadd.f32 %v2890_v11, %v6045_v47  ;;  %v3001_v39 = vadd.f32 %v6095_v3, %v2899_v9 }
 0x60d   : > { %v4866_v17 = vpop.f32.mrf.mxu1 }
 0x60e   : > { %v2902_v19 = vadd.f32 %v4866_v17, %v6047_v13  ;;  %v2999_v61 = vadd.f32 %v6095_v3, %v2891_v55  ;;  %v3033_v47 = vmax.f32 %v3001_v39, 0.0 }
 0x60f   : > { %v2893_v21 = vpop.f32.mrf.mxu1 }
 0x610   : > { %v3002_v23 = vadd.f32 %v6095_v3, %v2902_v19  ;;  %v2894_v46 = vadd.f32 %v2893_v21, %v6049_v27  ;;  %v3031_v5 = vmax.f32 %v2999_v61, 0.0 }
 0x612   : > { %v3000_v2 = vadd.f32 %v6095_v3, %v2894_v46  ;;  %v3034_v48 = vmax.f32 %v3002_v23, 0.0 }
 0x614   : > { %v3032_v31 = vmax.f32 %v3000_v2, 0.0  ;;  %v6129_v38 = vpack.c.bf16 %v3034_v48, %v3033_v47 }
 0x616   : > { %v6127_v52 = vpack.c.bf16 %v3032_v31, %v3031_v5 }
 0x618   : > { %4911 = vmatprep.mubr.bf16.mxu1 %v6127_v52 }
 0x619   : > { %v4869_v13 = vpop.f32.mrf.mxu1  ;;  %4912 = vmatmul.mubr.bf16.gmra.mxu1 %v6129_v38 }
 0x61a   : > { %v2915_v44 = vadd.f32 %v4869_v13, %v6051_v54 }
 0x61b   : > { %v2906_v15 = vpop.f32.mrf.mxu1 }
 0x61c   : > { %v2907_v27 = vadd.f32 %v2906_v15, %v6053_v26  ;;  %v3005_v63 = vadd.f32 %v6095_v3, %v2915_v44 }
 0x61d   : > { %v4870_v45 = vpop.f32.mrf.mxu1 }
 0x61e   : > { %v2918_v30 = vadd.f32 %v4870_v45, %v6055_v53  ;;  %v3003_v58 = vadd.f32 %v6095_v3, %v2907_v27  ;;  %v3037_v26 = vmax.f32 %v3005_v63, 0.0 }
 0x61f   : > { %v2909_v25 = vpop.f32.mrf.mxu1 }
 0x620   : > { %v3006_v59 = vadd.f32 %v6095_v3, %v2918_v30  ;;  %v2910_v62 = vadd.f32 %v2909_v25, %v6057_v33  ;;  %v3035_v10 = vmax.f32 %v3003_v58, 0.0 }
 0x622   : > { %v3004_v4 = vadd.f32 %v6095_v3, %v2910_v62  ;;  %v3038_v6 = vmax.f32 %v3006_v59, 0.0 }
 0x624   : > { %v3036_v11 = vmax.f32 %v3004_v4, 0.0  ;;  %v6143_v54 = vpack.c.bf16 %v3038_v6, %v3037_v26 }
 0x626   : > { %v6141_v55 = vpack.c.bf16 %v3036_v11, %v3035_v10 }
 0x628   : > { %4915 = vmatprep.mubr.bf16.mxu1 %v6141_v55 }
 0x629   : > { %v4873_v53 = vpop.f32.mrf.mxu1  ;;  %4916 = vmatmul.mubr.bf16.gmra.mxu1 %v6143_v54 }
 0x62a   : > { %v2931_v17 = vadd.f32 %v4873_v53, %v6059_v56 }
 0x62b   : > { %v2922_v9 = vpop.f32.mrf.mxu1 }
 0x62c   : > { %v2923_v33 = vadd.f32 %v2922_v9, %v6061_v37  ;;  %v3009_v2 = vadd.f32 %v6095_v3, %v2931_v17 }
 0x62d   : > { %v4874_v19 = vpop.f32.mrf.mxu1 }
 0x62e   : > { %v2934_v21 = vadd.f32 %v4874_v19, %v6063_v40  ;;  %v3007_v23 = vadd.f32 %v6095_v3, %v2923_v33  ;;  %v3041_v37 = vmax.f32 %v3009_v2, 0.0 }
 0x62f   : > { %v2925_v61 = vpop.f32.mrf.mxu1 }
 0x630   : > { %v3010_v46 = vadd.f32 %v6095_v3, %v2934_v21  ;;  %v2926_v39 = vadd.f32 %v2925_v61, %v6065_v34  ;;  %v3039_v31 = vmax.f32 %v3007_v23, 0.0 }
 0x632   : > { %v3008_v48 = vadd.f32 %v6095_v3, %v2926_v39  ;;  %v3042_v5 = vmax.f32 %v3010_v46, 0.0 }
 0x634   : > { %v3040_v47 = vmax.f32 %v3008_v48, 0.0  ;;  %v6157_v56 = vpack.c.bf16 %v3042_v5, %v3041_v37 }
 0x636   : > { %v6155_v13 = vpack.c.bf16 %v3040_v47, %v3039_v31 }
 0x638   : > { %4919 = vmatprep.mubr.bf16.mxu1 %v6155_v13 }
 0x639   : > { %v4877_v40 = vpop.f32.mrf.mxu1  ;;  %4920 = vmatmul.mubr.bf16.gmra.mxu1 %v6157_v56 }
 0x63a   : > { %v2947_v27 = vadd.f32 %v4877_v40, %v6067_v57 }
 0x63b   : > { %v2938_v15 = vpop.f32.mrf.mxu1 }
 0x63c   : > { %v2939_v34 = vadd.f32 %v2938_v15, %v6069_v42  ;;  %v3013_v62 = vadd.f32 %v6095_v3, %v2947_v27 }
 0x63d   : > { %v4878_v44 = vpop.f32.mrf.mxu1 }
 0x63e   : > { %v2950_v45 = vadd.f32 %v4878_v44, %v6071_v36  ;;  %v3011_v25 = vadd.f32 %v6095_v3, %v2939_v34  ;;  %v3045_v42 = vmax.f32 %v3013_v62, 0.0 }
 0x63f   : > { %v2941_v30 = vpop.f32.mrf.mxu1 }
 0x640   : > { %v3014_v58 = vadd.f32 %v6095_v3, %v2950_v45  ;;  %v2942_v59 = vadd.f32 %v2941_v30, %v6073_v28  ;;  %v3043_v6 = vmax.f32 %v3011_v25, 0.0 }
 0x642   : > { %v3012_v63 = vadd.f32 %v6095_v3, %v2942_v59  ;;  %v3046_v4 = vmax.f32 %v3014_v58, 0.0 }
 0x644   : > { %v3044_v10 = vmax.f32 %v3012_v63, 0.0  ;;  %v3066_v57 = vpack.c.bf16 %v3046_v4, %v3045_v42  ;;  %v5181_v63 = vld [vmem:[#allocation2 + $0xb4] ss:$8 sps:$4 sm:$0xff]   ;;  %v5182_v4 = vld [vmem:[#allocation2 + $0xb0] ss:$8 sps:$4 sm:$0xff]  }
 0x645   : > { %v5185_v42 = vld [vmem:[#allocation2 + $0xd4] ss:$8 sps:$4 sm:$0xff]  }
 0x646   : > { %v3065_v11 = vpack.c.bf16 %v3044_v10, %v3043_v6  ;;  %v5183_v6 = vld [vmem:[#allocation2 + $0xc4] ss:$8 sps:$4 sm:$0xff]   ;;  %v5184_v10 = vld [vmem:[#allocation2 + $0xc0] ss:$8 sps:$4 sm:$0xff]  }
 0x648   : > { %4923 = vmatprep.mubr.bf16.mxu1 %v3065_v11 }
 0x649   : > { %v4881_v26 = vpop.f32.mrf.mxu1  ;;  %4924 = vmatmul.mubr.bf16.gmra.mxu1 %v3066_v57 }
 0x64a   : > { %v2963_v9 = vadd.f32 %v4881_v26, %v6075_v20  ;;  %v5188_v26 = vld [vmem:[#allocation2 + $0xe0] ss:$8 sps:$4 sm:$0xff]  }
 0x64b   : > { %v2954_v36 = vpop.f32.mrf.mxu1 }
 0x64c   : > { %v2955_v53 = vadd.f32 %v2954_v36, %v6077_v29  ;;  %v3017_v23 = vadd.f32 %v6095_v3, %v2963_v9  ;;  %v5189_v36 = vld [vmem:[#allocation2 + $0xf4] ss:$8 sps:$4 sm:$0xff]  }
 0x64d   : > { %v4882_v33 = vpop.f32.mrf.mxu1 }
 0x64e   : > { %v2966_v28 = vadd.f32 %v4882_v33, %v6079_v49  ;;  %v3015_v19 = vadd.f32 %v6095_v3, %v2955_v53  ;;  %v3049_v29 = vmax.f32 %v3017_v23, 0.0  ;;  %v5190_v53 = vld [vmem:[#allocation2 + $0xf0] ss:$8 sps:$4 sm:$0xff]  }
 0x64f   : > { %v2957_v17 = vpop.f32.mrf.mxu1 }
 0x650   : > { %v3018_v21 = vadd.f32 %v6095_v3, %v2966_v28  ;;  %v2958_v61 = vadd.f32 %v2957_v17, %v6081_v35  ;;  %v3047_v2 = vmax.f32 %v3015_v19, 0.0 }
 0x652   : > { %v3016_v46 = vadd.f32 %v6095_v3, %v2958_v61  ;;  %v3050_v39 = vmax.f32 %v3018_v21, 0.0 }
 0x654   : > { %v3048_v48 = vmax.f32 %v3016_v46, 0.0  ;;  %v3068_v20 = vpack.c.bf16 %v3050_v39, %v3049_v29 }
 0x656   : > { %v3067_v5 = vpack.c.bf16 %v3048_v48, %v3047_v2 }
 0x658   : > { %4927 = vmatprep.mubr.bf16.mxu1 %v3067_v5 }
 0x659   : > { %v4885_v31 = vpop.f32.mrf.mxu1  ;;  %4928 = vmatmul.mubr.bf16.gmra.mxu1 %v3068_v20 }
 0x65a   : > { %v2979_v49 = vadd.f32 %v4885_v31, %v6083_v51 }
 0x65b   : > { %v2970_v47 = vpop.f32.mrf.mxu1 }
 0x65c   : > { %v2971_v37 = vadd.f32 %v2970_v47, %v6085_v60  ;;  %v3021_v35 = vadd.f32 %v6095_v3, %v2979_v49 }
 0x65d   : > { %v4886_v40 = vpop.f32.mrf.mxu1 }
 0x65e   : > { %v2982_v15 = vadd.f32 %v4886_v40, %v6087_v50  ;;  %v3019_v27 = vadd.f32 %v6095_v3, %v2971_v37  ;;  %v3053_v30 = vmax.f32 %v3021_v35, 0.0  ;;  %v5168_v50 = vld [vmem:[#allocation2 + $0x40] ss:$8 sps:$4 sm:$0xff]  }
 0x65f   : > { %v2973_v34 = vpop.f32.mrf.mxu1 }
 0x660   : > { %v3022_v44 = vadd.f32 %v6095_v3, %v2982_v15  ;;  %v2974_v45 = vadd.f32 %v2973_v34, %v6089_v0  ;;  %v3051_v51 = vmax.f32 %v3019_v27, 0.0  ;;  %v5169_v0 = vld [vmem:[#allocation2 + $0x54] ss:$8 sps:$4 sm:$0xff]  }
 0x662   : > { %v3054_v25 = vmax.f32 %v3022_v44, 0.0  ;;  %v3020_v58 = vadd.f32 %v6095_v3, %v2974_v45  ;;  %v5170_v3 = vld [vmem:[#allocation2 + $0x50] ss:$8 sps:$4 sm:$0xff]  }
 0x664   : > { %v3052_v59 = vmax.f32 %v3020_v58, 0.0  ;;  %v3070_v62 = vpack.c.bf16 %v3054_v25, %v3053_v30 }
 0x666   : > { %4471 = vmatprep.subr.bf16.mxu0 %v3070_v62  ;;  %v3069_v60 = vpack.c.bf16 %v3052_v59, %v3051_v51 }
 0x667   : > { %4472 = vmatpush3.bf16.msra.mxu0 %v6143_v54  ;;  %v5157_v54 = vld [vmem:[%s6449_s11 + $0x8] sm:$0xff]  }
 0x668   : > { %4473 = vmatprep.subr.bf16.mxu0 %v3069_v60  ;;  %4931 = vmatprep.mubr.bf16.mxu1 %v3069_v60 }
 0x669   : > { %4932 = vmatmul.mubr.bf16.gmra.mxu1 %v3070_v62 }
 0x66b   : > { %4474 = vmatpush3.bf16.msra.mxu0 %v6141_v55  ;;  %v5179_v55 = vld [vmem:[#allocation2 + $0xa4] ss:$8 sps:$4 sm:$0xff]  }
 0x66c   : > { %4475 = vmatprep.subr.bf16.mxu0 %v3068_v20 }
 0x66f   : > { %4476 = vmatpush3.bf16.msra.mxu0 %v6129_v38  ;;  %v5178_v38 = vld [vmem:[#allocation2 + $0x90] ss:$8 sps:$4 sm:$0xff]  }
 0x670   : > { %4477 = vmatprep.subr.bf16.mxu0 %v3067_v5 }
 0x673   : > { %4478 = vmatpush3.bf16.msra.mxu0 %v6127_v52  ;;  %v5156_v52 = vld [vmem:[%s6449_s11 + $0x10] sm:$0xff]  }
 0x674   : > { %4479 = vmatprep.subr.bf16.mxu0 %v3066_v57  ;;  %v5187_v57 = vld [vmem:[#allocation2 + $0xe4] ss:$8 sps:$4 sm:$0xff]  }
 0x677   : > { %4480 = vmatpush3.bf16.msra.mxu0 %v6115_v22  ;;  %v5155_v22 = vld [vmem:[%s6449_s11 + $0x18] sm:$0xff]  }
 0x678   : > { %4481 = vmatprep.subr.bf16.mxu0 %v3065_v11  ;;  %v5186_v11 = vld [vmem:[#allocation2 + $0xd0] ss:$8 sps:$4 sm:$0xff]  }
 0x67b   : > { %4482 = vmatpush3.bf16.msra.mxu0 %v6113_v7  ;;  %v5177_v7 = vld [vmem:[#allocation2 + $0x94] ss:$8 sps:$4 sm:$0xff]  }
 0x67c   : > { %4483 = vmatprep.subr.bf16.mxu0 %v6157_v56  ;;  %v5180_v56 = vld [vmem:[#allocation2 + $0xa0] ss:$8 sps:$4 sm:$0xff]  }
 0x67f   : > { %4484 = vmatpush3.bf16.msra.mxu0 %v6103_v43  ;;  %v5176_v43 = vld [vmem:[#allocation2 + $0x80] ss:$8 sps:$4 sm:$0xff]  }
 0x680   : > { %4485 = vmatprep.subr.bf16.mxu0 %v6155_v13  ;;  %v5158_v13 = vld [vmem:[%s6449_s11] sm:$0xff]  }
 0x683   : > { %4486 = vmatpush3.bf16.msra.mxu0 %v6101_v18  ;;  %v5175_v18 = vld [vmem:[#allocation2 + $0x84] ss:$8 sps:$4 sm:$0xff]  }
 0x686   : > { %3137 = vmatmul.mubr.bf16.vlgmr.msra.gmra.mxu0 %v5942_v8  ;;  %v5171_v8 = vld [vmem:[#allocation2 + $0x64] ss:$8 sps:$4 sm:$0xff]  }
 0x687   : > { %3144 = vmatprep.mubr.bf16.mxu0 %v5945_v16  ;;  %v5151_v16 = vld [vmem:[%s6449_s11 + $0x38] sm:$0xff]  }
 0x688   : > { %4935 = vmatprep.subr.bf16.mxu1 %v5151_v16 }
 0x689   : > { %4936 = vmatpush3.bf16.msra.mxu1 %v5151_v16 }
 0x68e   : > { %3145 = vmatmul.mubr.bf16.gmra.mxu0 %v5948_v32  ;;  %v5152_v32 = vld [vmem:[%s6449_s11 + $0x30] sm:$0xff]  }
 0x68f   : > { %3152 = vmatprep.mubr.bf16.mxu0 %v5951_v14  ;;  %4937 = vmatprep.subr.bf16.mxu1 %v5152_v32  ;;  %v5153_v14 = vld [vmem:[%s6449_s11 + $0x28] sm:$0xff]  }
 0x690   : > { %4938 = vmatpush3.bf16.msra.mxu1 %v5152_v32 }
 0x691   : > { %4939 = vmatprep.subr.bf16.mxu1 %v5153_v14 }
 0x694   : > { %4940 = vmatpush3.bf16.msra.mxu1 %v5153_v14 }
 0x696   : > { %3153 = vmatmul.mubr.bf16.gmra.mxu0 %v5954_v24  ;;  %v5172_v24 = vld [vmem:[#allocation2 + $0x60] ss:$8 sps:$4 sm:$0xff]  }
 0x697   : > { %3160 = vmatprep.mubr.bf16.mxu0 %v5957_v12  ;;  %v5173_v12 = vld [vmem:[#allocation2 + $0x74] ss:$8 sps:$4 sm:$0xff]  }
 0x69e   : > { %3161 = vmatmul.mubr.bf16.gmra.mxu0 %v5960_v41  ;;  %v5154_v41 = vld [vmem:[%s6449_s11 + $0x20] sm:$0xff]  }
 0x69f   : > { %3168 = vmatprep.mubr.bf16.mxu0 %v5963_v1  ;;  %4941 = vmatprep.subr.bf16.mxu1 %v5154_v41  ;;  %v5174_v1 = vld [vmem:[#allocation2 + $0x70] ss:$8 sps:$4 sm:$0xff]  }
 0x6a0   : > { %4942 = vmatpush3.bf16.msra.mxu1 %v5154_v41 }
 0x6a1   : > { %4943 = vmatprep.subr.bf16.mxu1 %v5155_v22 }
 0x6a4   : > { %4944 = vmatpush3.bf16.msra.mxu1 %v5155_v22 }
 0x6a5   : > { %4945 = vmatprep.subr.bf16.mxu1 %v5156_v52 }
 0x6a6   : > { %3169 = vmatmul.mubr.bf16.gmra.mxu0 %v5168_v50 }
 0x6a7   : > { %3176 = vmatprep.mubr.bf16.mxu0 %v5169_v0 }
 0x6a8   : > { %4946 = vmatpush3.bf16.msra.mxu1 %v5156_v52 }
 0x6a9   : > { %4947 = vmatprep.subr.bf16.mxu1 %v5157_v54 }
 0x6ac   : > { %4948 = vmatpush3.bf16.msra.mxu1 %v5157_v54 }
 0x6ad   : > { %4949 = vmatprep.subr.bf16.mxu1 %v5158_v13 }
 0x6ae   : > { %3177 = vmatmul.mubr.bf16.gmra.mxu0 %v5170_v3 }
 0x6af   : > { %3184 = vmatprep.mubr.bf16.mxu0 %v5171_v8 }
 0x6b0   : > { %4950 = vmatpush3.bf16.msra.mxu1 %v5158_v13 }
 0x6b6   : > { %3185 = vmatmul.mubr.bf16.gmra.mxu0 %v5172_v24 }
 0x6b7   : > { %3192 = vmatprep.mubr.bf16.mxu0 %v5173_v12 }
 0x6be   : > { %3193 = vmatmul.mubr.bf16.gmra.mxu0 %v5174_v1 }
 0x6bf   : > { %3200 = vmatprep.mubr.bf16.mxu0 %v5175_v18 }
 0x6c6   : > { %3201 = vmatmul.mubr.bf16.gmra.mxu0 %v5176_v43 }
 0x6c7   : > { %3208 = vmatprep.mubr.bf16.mxu0 %v5177_v7 }
 0x6ce   : > { %3209 = vmatmul.mubr.bf16.gmra.mxu0 %v5178_v38 }
 0x6cf   : > { %3216 = vmatprep.mubr.bf16.mxu0 %v5179_v55 }
 0x6d6   : > { %3217 = vmatmul.mubr.bf16.gmra.mxu0 %v5180_v56 }
 0x6d7   : > { %3224 = vmatprep.mubr.bf16.mxu0 %v5181_v63 }
 0x6de   : > { %3225 = vmatmul.mubr.bf16.gmra.mxu0 %v5182_v4 }
 0x6df   : > { %3232 = vmatprep.mubr.bf16.mxu0 %v5183_v6 }
 0x6e6   : > { %3233 = vmatmul.mubr.bf16.gmra.mxu0 %v5184_v10 }
 0x6e7   : > { %3240 = vmatprep.mubr.bf16.mxu0 %v5185_v42 }
 0x6ee   : > { %3241 = vmatmul.mubr.bf16.gmra.mxu0 %v5186_v11 }
 0x6ef   : > { %3248 = vmatprep.mubr.bf16.mxu0 %v5187_v57 }
 0x6f6   : > { %3249 = vmatmul.mubr.bf16.gmra.mxu0 %v5188_v26 }
 0x6f7   : > { %3256 = vmatprep.mubr.bf16.mxu0 %v5189_v36 }
 0x6fe   : > { %3257 = vmatmul.mubr.bf16.gmra.mxu0 %v5190_v53 }
 0x746   : > { %v4487_v9 = vpop.f32.mrf.mxu0 }
 0x748   : > { %v4488_v33 = vpop.f32.mrf.mxu0 }
 0x749   : > { %v4489_v19 = vadd.f32 %v4488_v33, %v4487_v9 }
 0x74a   : > { %v4490_v28 = vpop.f32.mrf.mxu0 }
 0x74c   : > { %v4491_v17 = vpop.f32.mrf.mxu0 }
 0x74d   : > { %v4492_v21 = vadd.f32 %v4491_v17, %v4490_v28 }
 0x74e   : > { %v4493_v61 = vpop.f32.mrf.mxu0 }
 0x74f   : > { %v3265_v23 = vpack.c.bf16 %v4492_v21, %v4489_v19 }
 0x750   : > { %v4494_v46 = vpop.f32.mrf.mxu0 }
 0x751   : > { %4951 = vmatprep.mubr.bf16.mxu1 %v3265_v23  ;;  %v4495_v48 = vadd.f32 %v4494_v46, %v4493_v61 }
 0x752   : > { %v4496_v39 = vpop.f32.mrf.mxu0 }
 0x754   : > { %v4497_v2 = vpop.f32.mrf.mxu0 }
 0x755   : > { %v4498_v29 = vadd.f32 %v4497_v2, %v4496_v39 }
 0x756   : > { %v4499_v5 = vpop.f32.mrf.mxu0 }
 0x757   : > { %v3266_v20 = vpack.c.bf16 %v4498_v29, %v4495_v48 }
 0x758   : > { %v4500_v31 = vpop.f32.mrf.mxu0 }
 0x759   : > { %4952 = vmatmul.mubr.bf16.vlgmr.msra.gmra.mxu1 %v3266_v20  ;;  %v4501_v37 = vadd.f32 %v4500_v31, %v4499_v5 }
 0x75a   : > { %v4502_v49 = vpop.f32.mrf.mxu0 }
 0x75c   : > { %v4503_v47 = vpop.f32.mrf.mxu0 }
 0x75d   : > { %v4504_v40 = vadd.f32 %v4503_v47, %v4502_v49 }
 0x75e   : > { %v4505_v35 = vpop.f32.mrf.mxu0 }
 0x75f   : > { %v3267_v15 = vpack.c.bf16 %v4504_v40, %v4501_v37 }
 0x760   : > { %v4506_v34 = vpop.f32.mrf.mxu0 }
 0x761   : > { %4955 = vmatprep.mubr.bf16.mxu1 %v3267_v15  ;;  %v4507_v45 = vadd.f32 %v4506_v34, %v4505_v35  ;;  %v6227_v34 = vpop.f32.mrf.mxu1 }
 0x762   : > { %v4508_v27 = vpop.f32.mrf.mxu0 }
 0x764   : > { %v4509_v44 = vpop.f32.mrf.mxu0 }
 0x765   : > { %v4510_v30 = vadd.f32 %v4509_v44, %v4508_v27 }
 0x766   : > { %v4511_v25 = vpop.f32.mrf.mxu0 }
 0x767   : > { %v3268_v58 = vpack.c.bf16 %v4510_v30, %v4507_v45  ;;  %v6229_v45 = vpop.f32.mrf.mxu1 }
 0x768   : > { %v4512_v51 = vpop.f32.mrf.mxu0 }
 0x769   : > { %4956 = vmatmul.mubr.bf16.gmra.mxu1 %v3268_v58  ;;  %v4513_v60 = vadd.f32 %v4512_v51, %v4511_v25 }
 0x76a   : > { %v4514_v59 = vpop.f32.mrf.mxu0 }
 0x76c   : > { %v4515_v62 = vpop.f32.mrf.mxu0 }
 0x76d   : > { %v4516_v50 = vadd.f32 %v4515_v62, %v4514_v59  ;;  %v4906_v62 = vpop.f32.mrf.mxu1 }
 0x76e   : > { %v4517_v0 = vpop.f32.mrf.mxu0 }
 0x76f   : > { %v3269_v3 = vpack.c.bf16 %v4516_v50, %v4513_v60 }
 0x770   : > { %v4518_v8 = vpop.f32.mrf.mxu0 }
 0x771   : > { %4959 = vmatprep.mubr.bf16.mxu1 %v3269_v3  ;;  %v4519_v14 = vadd.f32 %v4518_v8, %v4517_v0  ;;  %v3366_v0 = vpop.f32.mrf.mxu1 }
 0x772   : > { %v4520_v16 = vpop.f32.mrf.mxu0 }
 0x774   : > { %v4521_v32 = vpop.f32.mrf.mxu0 }
 0x775   : > { %v4522_v24 = vadd.f32 %v4521_v32, %v4520_v16  ;;  %v6231_v32 = vpop.f32.mrf.mxu1 }
 0x776   : > { %v4523_v12 = vpop.f32.mrf.mxu0 }
 0x777   : > { %v3270_v41 = vpack.c.bf16 %v4522_v24, %v4519_v14 }
 0x778   : > { %v4524_v1 = vpop.f32.mrf.mxu0 }
 0x779   : > { %4960 = vmatmul.mubr.bf16.gmra.mxu1 %v3270_v41  ;;  %v4525_v7 = vadd.f32 %v4524_v1, %v4523_v12  ;;  %v3379_v41 = vpop.f32.mrf.mxu1 }
 0x77a   : > { %v4526_v18 = vpop.f32.mrf.mxu0 }
 0x77c   : > { %v4527_v43 = vpop.f32.mrf.mxu0 }
 0x77d   : > { %v4528_v22 = vadd.f32 %v4527_v43, %v4526_v18 }
 0x77e   : > { %v4529_v52 = vpop.f32.mrf.mxu0 }
 0x77f   : > { %v3271_v38 = vpack.c.bf16 %v4528_v22, %v4525_v7  ;;  %v4910_v22 = vpop.f32.mrf.mxu1 }
 0x780   : > { %v4530_v55 = vpop.f32.mrf.mxu0 }
 0x781   : > { %4963 = vmatprep.mubr.bf16.mxu1 %v3271_v38  ;;  %v4531_v56 = vadd.f32 %v4530_v55, %v4529_v52 }
 0x782   : > { %v4532_v54 = vpop.f32.mrf.mxu0 }
 0x784   : > { %v4533_v13 = vpop.f32.mrf.mxu0 }
 0x785   : > { %v4534_v63 = vadd.f32 %v4533_v13, %v4532_v54  ;;  %v3382_v54 = vpop.f32.mrf.mxu1 }
 0x786   : > { %v4535_v4 = vpop.f32.mrf.mxu0 }
 0x787   : > { %v3272_v6 = vpack.c.bf16 %v4534_v63, %v4531_v56  ;;  %v4913_v56 = vpop.f32.mrf.mxu1 }
 0x788   : > { %v4536_v10 = vpop.f32.mrf.mxu0 }
 0x789   : > { %4964 = vmatmul.mubr.bf16.gmra.mxu1 %v3272_v6  ;;  %v4537_v57 = vadd.f32 %v4536_v10, %v4535_v4  ;;  %v3395_v10 = vpop.f32.mrf.mxu1 }
 0x78a   : > { %v4538_v42 = vpop.f32.mrf.mxu0 }
 0x78c   : > { %v4539_v11 = vpop.f32.mrf.mxu0 }
 0x78d   : > { %v4540_v26 = vadd.f32 %v4539_v11, %v4538_v42  ;;  %v6233_v42 = vpop.f32.mrf.mxu1 }
 0x78e   : > { %v4541_v36 = vpop.f32.mrf.mxu0 }
 0x78f   : > { %v3273_v53 = vpack.c.bf16 %v4540_v26, %v4537_v57  ;;  %v6235_v11 = vpop.f32.mrf.mxu1 }
 0x790   : > { %v4542_v9 = vpop.f32.mrf.mxu0 }
 0x791   : > { %4967 = vmatprep.mubr.bf16.mxu1 %v3273_v53  ;;  %v4543_v17 = vadd.f32 %v4542_v9, %v4541_v36  ;;  %v6237_v57 = vpop.f32.mrf.mxu1 }
 0x792   : > { %v4544_v33 = vpop.f32.mrf.mxu0 }
 0x793   : > { %v6239_v26 = vpop.f32.mrf.mxu1 }
 0x794   : > { %v4545_v28 = vpop.f32.mrf.mxu0 }
 0x795   : > { %v4546_v19 = vadd.f32 %v4545_v28, %v4544_v33  ;;  %v6241_v36 = vpop.f32.mrf.mxu1 }
 0x796   : > { %v4547_v21 = vpop.f32.mrf.mxu0 }
 0x797   : > { %v3274_v61 = vpack.c.bf16 %v4546_v19, %v4543_v17  ;;  %v6243_v53 = vpop.f32.mrf.mxu1 }
 0x798   : > { %v4548_v23 = vpop.f32.mrf.mxu0 }
 0x799   : > { %4968 = vmatmul.mubr.bf16.gmra.mxu1 %v3274_v61  ;;  %v4549_v2 = vadd.f32 %v4548_v23, %v4547_v21  ;;  %v6245_v9 = vpop.f32.mrf.mxu1 }
 0x79a   : > { %v4550_v46 = vpop.f32.mrf.mxu0 }
 0x79b   : > { %v6247_v33 = vpop.f32.mrf.mxu1 }
 0x79c   : > { %v4551_v39 = vpop.f32.mrf.mxu0 }
 0x79d   : > { %v4552_v48 = vadd.f32 %v4551_v39, %v4550_v46  ;;  %v6249_v28 = vpop.f32.mrf.mxu1 }
 0x79e   : > { %v4553_v29 = vpop.f32.mrf.mxu0 }
 0x79f   : > { %v3275_v5 = vpack.c.bf16 %v4552_v48, %v4549_v2  ;;  %v6251_v17 = vpop.f32.mrf.mxu1 }
 0x7a0   : > { %v4554_v20 = vpop.f32.mrf.mxu0 }
 0x7a1   : > { %4971 = vmatprep.mubr.bf16.mxu1 %v3275_v5  ;;  %v4555_v47 = vadd.f32 %v4554_v20, %v4553_v29  ;;  %v6253_v19 = vpop.f32.mrf.mxu1 }
 0x7a2   : > { %v4556_v31 = vpop.f32.mrf.mxu0 }
 0x7a3   : > { %v6255_v21 = vpop.f32.mrf.mxu1 }
 0x7a4   : > { %v4557_v49 = vpop.f32.mrf.mxu0 }
 0x7a5   : > { %v4558_v37 = vadd.f32 %v4557_v49, %v4556_v31  ;;  %v6257_v61 = vpop.f32.mrf.mxu1  ;;  %v6280_v49 = vld [vmem:[%s6451_s13] ss:$0 sm:$0xff] }
 0x7a6   : > { %v4559_v40 = vpop.f32.mrf.mxu0 }
 0x7a7   : > { %v3276_v35 = vpack.c.bf16 %v4558_v37, %v4555_v47  ;;  %v6259_v23 = vpop.f32.mrf.mxu1 }
 0x7a8   : > { %v4560_v15 = vpop.f32.mrf.mxu0 }
 0x7a9   : > { %4972 = vmatmul.mubr.bf16.gmra.mxu1 %v3276_v35  ;;  %v4561_v30 = vadd.f32 %v4560_v15, %v4559_v40  ;;  %v6261_v46 = vpop.f32.mrf.mxu1 }
 0x7aa   : > { %v4562_v27 = vpop.f32.mrf.mxu0 }
 0x7ab   : > { %v6263_v39 = vpop.f32.mrf.mxu1 }
 0x7ac   : > { %v4563_v44 = vpop.f32.mrf.mxu0 }
 0x7ad   : > { %v4564_v25 = vadd.f32 %v4563_v44, %v4562_v27  ;;  %v6265_v2 = vpop.f32.mrf.mxu1 }
 0x7ae   : > { %v4565_v58 = vpop.f32.mrf.mxu0 }
 0x7af   : > { %v3277_v51 = vpack.c.bf16 %v4564_v25, %v4561_v30  ;;  %v6267_v48 = vpop.f32.mrf.mxu1 }
 0x7b0   : > { %v4566_v59 = vpop.f32.mrf.mxu0 }
 0x7b1   : > { %4975 = vmatprep.mubr.bf16.mxu1 %v3277_v51  ;;  %v4567_v3 = vadd.f32 %v4566_v59, %v4565_v58  ;;  %v6269_v29 = vpop.f32.mrf.mxu1 }
 0x7b2   : > { %v4568_v60 = vpop.f32.mrf.mxu0 }
 0x7b3   : > { %v6271_v5 = vpop.f32.mrf.mxu1 }
 0x7b4   : > { %v4569_v50 = vpop.f32.mrf.mxu0 }
 0x7b5   : > { %v4570_v8 = vadd.f32 %v4569_v50, %v4568_v60  ;;  %v6273_v20 = vpop.f32.mrf.mxu1 }
 0x7b6   : > { %v4571_v16 = vpop.f32.mrf.mxu0 }
 0x7b7   : > { %v3278_v14 = vpack.c.bf16 %v4570_v8, %v4567_v3  ;;  %v6275_v31 = vpop.f32.mrf.mxu1 }
 0x7b8   : > { %v4572_v24 = vpop.f32.mrf.mxu0 }
 0x7b9   : > { %4976 = vmatmul.mubr.bf16.gmra.mxu1 %v3278_v14  ;;  %v4573_v18 = vadd.f32 %v4572_v24, %v4571_v16 }
 0x7ba   : > { %v4574_v12 = vpop.f32.mrf.mxu0 }
 0x7bc   : > { %v4575_v1 = vpop.f32.mrf.mxu0 }
 0x7bd   : > { %v4576_v43 = vadd.f32 %v4575_v1, %v4574_v12 }
 0x7be   : > { %v4577_v7 = vpop.f32.mrf.mxu0 }
 0x7bf   : > { %v3279_v52 = vpack.c.bf16 %v4576_v43, %v4573_v18 }
 0x7c0   : > { %v4578_v38 = vpop.f32.mrf.mxu0 }
 0x7c1   : > { %4979 = vmatprep.mubr.bf16.mxu1 %v3279_v52  ;;  %v4579_v63 = vadd.f32 %v4578_v38, %v4577_v7 }
 0x7c2   : > { %v4580_v55 = vpop.f32.mrf.mxu0 }
 0x7c4   : > { %v4581_v13 = vpop.f32.mrf.mxu0 }
 0x7c5   : > { %v4582_v4 = vadd.f32 %v4581_v13, %v4580_v55 }
 0x7c7   : > { %v3280_v6 = vpack.c.bf16 %v4582_v4, %v4579_v63 }
 0x7c9   : > { %4980 = vmatmul.mubr.bf16.gmra.mxu1 %v3280_v6 }
 0x819   : > { %v4953_v47 = vpop.f32.mrf.mxu1 }
 0x81a   : > { %v3581_v37 = vadd.f32 %v4953_v47, %v6227_v34 }
 0x81b   : > { %v3572_v40 = vpop.f32.mrf.mxu1 }
 0x81c   : > { %v3707_v35 = vadd.f32 %v6280_v49, %v3581_v37  ;;  %v3573_v15 = vadd.f32 %v3572_v40, %v6229_v45 }
 0x81d   : > { %v4954_v27 = vpop.f32.mrf.mxu1 }
 0x81e   : > { %3739 = vst [vmem:[%s6452_s14 + $0x10] sm:$0xff] %v3707_v35  ;;  %v3705_v44 = vadd.f32 %v6280_v49, %v3573_v15  ;;  %v3584_v30 = vadd.f32 %v4954_v27, %v4906_v62 }
 0x81f   : > { %v3575_v25 = vpop.f32.mrf.mxu1 }
 0x820   : > { %3737 = vst [vmem:[%s6452_s14] sm:$0xff] %v3705_v44  ;;  %v3708_v34 = vadd.f32 %v6280_v49, %v3584_v30  ;;  %v3576_v58 = vadd.f32 %v3575_v25, %v3366_v0 }
 0x822   : > { %3740 = vst [vmem:[%s6452_s14 + $0x18] sm:$0xff] %v3708_v34  ;;  %v3706_v45 = vadd.f32 %v6280_v49, %v3576_v58 }
 0x824   : > { %3738 = vst [vmem:[%s6452_s14 + $0x8] sm:$0xff] %v3706_v45 }
 0x829   : > { %v4957_v51 = vpop.f32.mrf.mxu1 }
 0x82a   : > { %v3597_v59 = vadd.f32 %v4957_v51, %v6231_v32 }
 0x82b   : > { %v3588_v62 = vpop.f32.mrf.mxu1 }
 0x82c   : > { %v3711_v60 = vadd.f32 %v6280_v49, %v3597_v59  ;;  %v3589_v50 = vadd.f32 %v3588_v62, %v3379_v41 }
 0x82d   : > { %v4958_v3 = vpop.f32.mrf.mxu1 }
 0x82e   : > { %3743 = vst [vmem:[%s6452_s14 + $0x30] sm:$0xff] %v3711_v60  ;;  %v3709_v0 = vadd.f32 %v6280_v49, %v3589_v50  ;;  %v3600_v8 = vadd.f32 %v4958_v3, %v4910_v22 }
 0x82f   : > { %v3591_v16 = vpop.f32.mrf.mxu1 }
 0x830   : > { %3741 = vst [vmem:[%s6452_s14 + $0x20] sm:$0xff] %v3709_v0  ;;  %v3712_v14 = vadd.f32 %v6280_v49, %v3600_v8  ;;  %v3592_v32 = vadd.f32 %v3591_v16, %v3382_v54 }
 0x832   : > { %3744 = vst [vmem:[%s6452_s14 + $0x38] sm:$0xff] %v3712_v14  ;;  %v3710_v24 = vadd.f32 %v6280_v49, %v3592_v32 }
 0x834   : > { %3742 = vst [vmem:[%s6452_s14 + $0x28] sm:$0xff] %v3710_v24 }
 0x839   : > { %v4961_v12 = vpop.f32.mrf.mxu1 }
 0x83a   : > { %v3613_v41 = vadd.f32 %v4961_v12, %v4913_v56 }
 0x83b   : > { %v3604_v1 = vpop.f32.mrf.mxu1 }
 0x83c   : > { %v3715_v18 = vadd.f32 %v6280_v49, %v3613_v41  ;;  %v3605_v43 = vadd.f32 %v3604_v1, %v3395_v10 }
 0x83d   : > { %v4962_v7 = vpop.f32.mrf.mxu1 }
 0x83e   : > { %3747 = vst [vmem:[%s6452_s14 + $0x50] sm:$0xff] %v3715_v18  ;;  %v3713_v22 = vadd.f32 %v6280_v49, %v3605_v43  ;;  %v3616_v52 = vadd.f32 %v4962_v7, %v6233_v42 }
 0x83f   : > { %v3607_v38 = vpop.f32.mrf.mxu1 }
 0x840   : > { %3745 = vst [vmem:[%s6452_s14 + $0x40] sm:$0xff] %v3713_v22  ;;  %v3716_v55 = vadd.f32 %v6280_v49, %v3616_v52  ;;  %v3608_v54 = vadd.f32 %v3607_v38, %v6235_v11 }
 0x842   : > { %3748 = vst [vmem:[%s6452_s14 + $0x58] sm:$0xff] %v3716_v55  ;;  %v3714_v13 = vadd.f32 %v6280_v49, %v3608_v54 }
 0x844   : > { %3746 = vst [vmem:[%s6452_s14 + $0x48] sm:$0xff] %v3714_v13 }
 0x849   : > { %v4965_v56 = vpop.f32.mrf.mxu1 }
 0x84a   : > { %v3629_v63 = vadd.f32 %v4965_v56, %v6237_v57 }
 0x84b   : > { %v3620_v4 = vpop.f32.mrf.mxu1 }
 0x84c   : > { %v3719_v6 = vadd.f32 %v6280_v49, %v3629_v63  ;;  %v3621_v10 = vadd.f32 %v3620_v4, %v6239_v26 }
 0x84d   : > { %v4966_v42 = vpop.f32.mrf.mxu1 }
 0x84e   : > { %3751 = vst [vmem:[%s6452_s14 + $0x70] sm:$0xff] %v3719_v6  ;;  %v3717_v11 = vadd.f32 %v6280_v49, %v3621_v10  ;;  %v3632_v47 = vadd.f32 %v4966_v42, %v6241_v36 }
 0x84f   : > { %v3623_v37 = vpop.f32.mrf.mxu1 }
 0x850   : > { %3749 = vst [vmem:[%s6452_s14 + $0x60] sm:$0xff] %v3717_v11  ;;  %v3720_v57 = vadd.f32 %v6280_v49, %v3632_v47  ;;  %v3624_v40 = vadd.f32 %v3623_v37, %v6243_v53 }
 0x852   : > { %3752 = vst [vmem:[%s6452_s14 + $0x78] sm:$0xff] %v3720_v57  ;;  %v3718_v26 = vadd.f32 %v6280_v49, %v3624_v40 }
 0x854   : > { %3750 = vst [vmem:[%s6452_s14 + $0x68] sm:$0xff] %v3718_v26 }
 0x859   : > { %v4969_v36 = vpop.f32.mrf.mxu1 }
 0x85a   : > { %v3645_v35 = vadd.f32 %v4969_v36, %v6245_v9 }
 0x85b   : > { %v3636_v15 = vpop.f32.mrf.mxu1 }
 0x85c   : > { %v3723_v27 = vadd.f32 %v6280_v49, %v3645_v35  ;;  %v3637_v44 = vadd.f32 %v3636_v15, %v6247_v33 }
 0x85d   : > { %v4970_v30 = vpop.f32.mrf.mxu1 }
 0x85e   : > { %3755 = vst [vmem:[%s6452_s14 + $0x90] sm:$0xff] %v3723_v27  ;;  %v3721_v53 = vadd.f32 %v6280_v49, %v3637_v44  ;;  %v3648_v25 = vadd.f32 %v4970_v30, %v6249_v28 }
 0x85f   : > { %v3639_v34 = vpop.f32.mrf.mxu1 }
 0x860   : > { %3753 = vst [vmem:[%s6452_s14 + $0x80] sm:$0xff] %v3721_v53  ;;  %v3724_v9 = vadd.f32 %v6280_v49, %v3648_v25  ;;  %v3640_v58 = vadd.f32 %v3639_v34, %v6251_v17 }
 0x862   : > { %3756 = vst [vmem:[%s6452_s14 + $0x98] sm:$0xff] %v3724_v9  ;;  %v3722_v33 = vadd.f32 %v6280_v49, %v3640_v58 }
 0x864   : > { %3754 = vst [vmem:[%s6452_s14 + $0x88] sm:$0xff] %v3722_v33 }
 0x869   : > { %v4973_v28 = vpop.f32.mrf.mxu1 }
 0x86a   : > { %v3661_v45 = vadd.f32 %v4973_v28, %v6253_v19 }
 0x86b   : > { %v3652_v51 = vpop.f32.mrf.mxu1 }
 0x86c   : > { %v3727_v59 = vadd.f32 %v6280_v49, %v3661_v45  ;;  %v3653_v62 = vadd.f32 %v3652_v51, %v6255_v21 }
 0x86d   : > { %v4974_v60 = vpop.f32.mrf.mxu1 }
 0x86e   : > { %3759 = vst [vmem:[%s6452_s14 + $0xb0] sm:$0xff] %v3727_v59  ;;  %v3725_v17 = vadd.f32 %v6280_v49, %v3653_v62  ;;  %v3664_v50 = vadd.f32 %v4974_v60, %v6257_v61 }
 0x86f   : > { %v3655_v3 = vpop.f32.mrf.mxu1 }
 0x870   : > { %3757 = vst [vmem:[%s6452_s14 + $0xa0] sm:$0xff] %v3725_v17  ;;  %v3728_v19 = vadd.f32 %v6280_v49, %v3664_v50  ;;  %v3656_v0 = vadd.f32 %v3655_v3, %v6259_v23 }
 0x872   : > { %3760 = vst [vmem:[%s6452_s14 + $0xb8] sm:$0xff] %v3728_v19  ;;  %v3726_v21 = vadd.f32 %v6280_v49, %v3656_v0 }
 0x874   : > { %3758 = vst [vmem:[%s6452_s14 + $0xa8] sm:$0xff] %v3726_v21 }
 0x879   : > { %v4977_v61 = vpop.f32.mrf.mxu1 }
 0x87a   : > { %v3677_v8 = vadd.f32 %v4977_v61, %v6261_v46 }
 0x87b   : > { %v3668_v16 = vpop.f32.mrf.mxu1 }
 0x87c   : > { %v3731_v14 = vadd.f32 %v6280_v49, %v3677_v8  ;;  %v3669_v32 = vadd.f32 %v3668_v16, %v6263_v39 }
 0x87d   : > { %v4978_v24 = vpop.f32.mrf.mxu1 }
 0x87e   : > { %3763 = vst [vmem:[%s6452_s14 + $0xd0] sm:$0xff] %v3731_v14  ;;  %v3729_v23 = vadd.f32 %v6280_v49, %v3669_v32  ;;  %v3680_v12 = vadd.f32 %v4978_v24, %v6265_v2 }
 0x87f   : > { %v3671_v41 = vpop.f32.mrf.mxu1 }
 0x880   : > { %3761 = vst [vmem:[%s6452_s14 + $0xc0] sm:$0xff] %v3729_v23  ;;  %v3732_v46 = vadd.f32 %v6280_v49, %v3680_v12  ;;  %v3672_v1 = vadd.f32 %v3671_v41, %v6267_v48 }
 0x882   : > { %3764 = vst [vmem:[%s6452_s14 + $0xd8] sm:$0xff] %v3732_v46  ;;  %v3730_v39 = vadd.f32 %v6280_v49, %v3672_v1 }
 0x884   : > { %3762 = vst [vmem:[%s6452_s14 + $0xc8] sm:$0xff] %v3730_v39 }
 0x889   : > { %v4981_v2 = vpop.f32.mrf.mxu1 }
 0x88a   : > { %v3693_v18 = vadd.f32 %v4981_v2, %v6269_v29 }
 0x88b   : > { %v3684_v43 = vpop.f32.mrf.mxu1 }
 0x88c   : > { %v3735_v7 = vadd.f32 %v6280_v49, %v3693_v18  ;;  %v3685_v22 = vadd.f32 %v3684_v43, %v6271_v5 }
 0x88d   : > { %v4982_v52 = vpop.f32.mrf.mxu1 }
 0x88e   : > { %3767 = vst [vmem:[%s6452_s14 + $0xf0] sm:$0xff] %v3735_v7  ;;  %v3733_v48 = vadd.f32 %v6280_v49, %v3685_v22  ;;  %v3696_v38 = vadd.f32 %v4982_v52, %v6273_v20 }
 0x88f   : > { %v3687_v55 = vpop.f32.mrf.mxu1 }
 0x890   : > { %3765 = vst [vmem:[%s6452_s14 + $0xe0] sm:$0xff] %v3733_v48  ;;  %v3736_v29 = vadd.f32 %v6280_v49, %v3696_v38  ;;  %v3688_v54 = vadd.f32 %v3687_v55, %v6275_v31 }
 0x892   : > { %3768 = vst [vmem:[%s6452_s14 + $0xf8] sm:$0xff] %v3736_v29  ;;  %v3734_v5 = vadd.f32 %v6280_v49, %v3688_v54 }
 0x894   : > { %3766 = vst [vmem:[%s6452_s14 + $0xe8] sm:$0xff] %v3734_v5 }
 0x895 PF: > { %s24_s29 = sadd.s32 1, %s5197_s29  }
 0x896   : > { %p21_p5 = scmp.ge.s32.totalorder %s24_s29, 4  }
 0x898   :  { %23 = sbr.rel (!%p21_p5) target bundleno = 1 (0x1), region = 109 }

</bundles_post_ra>
